<compile_context>
chip_gen: v7x
topology: tpu7x:2x2x1
jax: 0.10.0
libtpu: 0.0.40
codegen_flags: <defaults>
</compile_context>

<pallas_src>
import functools

import jax
import jax.numpy as jnp
from jax.experimental import pallas as pl
from jax.experimental.pallas import tpu as pltpu

EPS = 1e-5


@functools.lru_cache(maxsize=None)
def _vmem_limit():
    """Generation-aware scoped-VMEM request: ~3/4 of physical VMEM
    (<= ~48 MiB on v7x's 64 MiB, ~96 MiB on v5e/v6e's 128 MiB)."""
    cap = 64 * 1024 * 1024
    try:
        cap = int(pltpu.get_tpu_info().vmem_capacity_bytes)
    except Exception:
        pass
    return int(min(cap * 3 // 4, 96 * 1024 * 1024))


def _pick_th(H, W, C, itemsize, target_bytes=2 * 1024 * 1024):
    """Row-block height for the conv passes: a divisor of H whose (th, W, C)
    tile stays a few MiB; prefer >1 row block per image for pipeline depth."""
    divs = [d for d in range(1, H + 1) if H % d == 0]
    fitting = [d for d in divs if d * W * C * itemsize <= target_bytes]
    th = max(fitting) if fitting else 1
    if th == H and H >= 16:          # force some grid depth on small images
        smaller = [d for d in divs if d < H]
        if smaller:
            th = max(smaller)
    return th


def _pick_rows(R, L, itemsize, target_bytes=2 * 1024 * 1024):
    """Row block for the elementwise pass: multiple of 8 (unmasked sublane
    tiles) dividing R, sized for a few MiB and >= 4 grid steps if possible."""
    divs = [d for d in range(8, R + 1, 8) if R % d == 0]
    if not divs:
        return R                     # full extent is always layout-legal
    fitting = [d for d in divs if d * L * itemsize <= target_bytes] or [min(divs)]
    deep = [d for d in fitting if R // d >= 4]
    return max(deep) if deep else max(fitting)


def _conv3x3_stats_kernel(*refs, pre_affine, add_residual, th, W, Cin, Cout, nr):
    """One (image, row-block) tile:
       optional folded-BN (scale*x+shift) + ReLU pre-activation,
       3x3 same-conv as a single K=9*Cin bf16 MXU matmul,
       optional residual add,
       per-tile per-channel sum / centred sum-of-squares partials."""
    it = iter(refs)
    top_ref = next(it)
    mid_ref = next(it)
    bot_ref = next(it)
    res_ref = next(it) if add_residual else None
    w_ref = next(it)
    s_ref = next(it) if pre_affine else None
    t_ref = next(it) if pre_affine else None
    z_ref = next(it)
    sum_ref = next(it)
    ssq_ref = next(it)

    r = pl.program_id(1)

    # (th+2, W, Cin) row slab: centre rows plus 1-row halo on each side.
    slab = jnp.concatenate([top_ref[...], mid_ref[...], bot_ref[...]],
                           axis=1).reshape(th + 2, W, Cin)

    if pre_affine:
        # Folded BatchNorm of the previous conv + ReLU as a single f32 FMA.
        slab = jnp.maximum(
            slab.astype(jnp.float32) * s_ref[...].reshape(1, 1, Cin)
            + t_ref[...].reshape(1, 1, Cin), 0.0)

    # Zero the out-of-image halo rows (conv zero padding).  Interior halo rows
    # (belonging to the neighbouring row block) keep their activated values.
    zero_row = jnp.zeros((1, W, Cin), slab.dtype)
    slab = jnp.concatenate(
        [jnp.where(r > 0, slab[0:1], zero_row),
         slab[1:th + 1],
         jnp.where(r < nr - 1, slab[th + 1:th + 2], zero_row)],
        axis=0).astype(jnp.bfloat16)                         # single cast

    # Zero-pad the two boundary columns, then build the im2col operand:
    # 9 shifted (th*W, Cin) views concatenated on the lane axis -> K = 9*Cin,
    # so the whole 3x3 conv is one MXU matmul (accumulation stays in the MXU).
    zcol = jnp.zeros((th + 2, 1, Cin), jnp.bfloat16)
    xpad = jnp.concatenate([zcol, slab, zcol], axis=1)       # (th+2, W+2, Cin)

    P = th * W
    taps = []
    for dy in range(3):
        for dx in range(3):
            taps.append(xpad[dy:dy + th, dx:dx + W, :].reshape(P, Cin))
    col = jnp.concatenate(taps, axis=-1)                     # (P, 9*Cin) bf16

    acc = jnp.dot(col, w_ref[...], preferred_element_type=jnp.float32)

    if add_residual:
        acc = acc + res_ref[...].reshape(P, Cout)            # f32 skip path

    # Store z in the requested dtype (bf16 for the inter-pass activation) and
    # compute the BN partials on exactly the values the next pass will read.
    zq = acc.astype(z_ref.dtype)
    z_ref[...] = zq.reshape(1, th, W, Cout)

    stat = zq.astype(jnp.float32)
    tsum = jnp.sum(stat, axis=0, keepdims=True)              # (1, Cout)
    cen = stat - tsum * (1.0 / P)
    tssq = jnp.sum(cen * cen, axis=0, keepdims=True)
    sum_ref[...] = tsum.reshape(1, 1, 1, Cout)
    ssq_ref[...] = tssq.reshape(1, 1, 1, Cout)


def _conv3x3_stats(x, w2d, *, th, out_dtype, pre_scale=None, pre_shift=None,
                   residual=None):
    """Tiled conv pass.  x: (N,H,W,Cin) bf16, w2d: (9*Cin,Cout) bf16.
    Returns (z, tsum, tssq): z = conv3x3(pre(x)) [+ residual] and per-tile
    per-channel sums / centred sums-of-squares of z for the following BN."""
    N, H, W, Cin = x.shape
    Cout = w2d.shape[-1]
    nr = H // th
    pre_affine = pre_scale is not None
    add_residual = residual is not None

    kernel = functools.partial(
        _conv3x3_stats_kernel, pre_affine=pre_affine, add_residual=add_residual,
        th=th, W=W, Cin=Cin, Cout=Cout, nr=nr)

    row_map = lambda n, r: (n, r, 0, 0)
    top_map = lambda n, r: (n, jnp.maximum(r * th - 1, 0), 0, 0)
    bot_map = lambda n, r: (n, jnp.minimum(r * th + th, H - 1), 0, 0)

    inputs = [x, x, x]
    in_specs = [pl.BlockSpec((1, 1, W, Cin), top_map),
                pl.BlockSpec((1, th, W, Cin), row_map),
                pl.BlockSpec((1, 1, W, Cin), bot_map)]
    if add_residual:
        inputs.append(residual)
        in_specs.append(pl.BlockSpec((1, th, W, Cout), row_map))
    inputs.append(w2d)
    in_specs.append(pl.BlockSpec((9 * Cin, Cout), lambda n, r: (0, 0)))
    if pre_affine:
        inputs += [pre_scale, pre_shift]
        in_specs += [pl.BlockSpec((1, Cin), lambda n, r: (0, 0))] * 2

    out_shape = (jax.ShapeDtypeStruct((N, H, W, Cout), out_dtype),
                 jax.ShapeDtypeStruct((N, nr, 1, Cout), jnp.float32),
                 jax.ShapeDtypeStruct((N, nr, 1, Cout), jnp.float32))
    out_specs = (pl.BlockSpec((1, th, W, Cout), row_map),
                 pl.BlockSpec((1, 1, 1, Cout), row_map),
                 pl.BlockSpec((1, 1, 1, Cout), row_map))

    return pl.pallas_call(
        kernel,
        grid=(N, nr),
        in_specs=in_specs,
        out_specs=out_specs,
        out_shape=out_shape,
        compiler_params=pltpu.CompilerParams(
            dimension_semantics=("parallel", "parallel"),
            vmem_limit_bytes=_vmem_limit()),
    )(*inputs)


def _finalize_bn(tsum, tssq, tile_count, gamma, beta):
    """Merge per-tile (sum, centred sum-of-squares) partials with Chan's
    parallel-variance formula and fold BN into one scale/shift FMA:
    z*scale + shift == gamma*(z-mean)/sqrt(var+eps) + beta  (biased var)."""
    C = tsum.shape[-1]
    n_tiles = tsum.shape[0] * tsum.shape[1]
    total = n_tiles * tile_count
    tile_mean = tsum / tile_count                              # (N, nr, 1, C)
    mean = jnp.sum(tsum, axis=(0, 1, 2)) / total               # (C,)
    m2 = (jnp.sum(tssq, axis=(0, 1, 2))
          + tile_count * jnp.sum((tile_mean - mean) ** 2, axis=(0, 1, 2)))
    var = jnp.maximum(m2 / total, 0.0)
    scale = gamma.reshape(1, C) * jax.lax.rsqrt(var.reshape(1, C) + EPS)
    shift = beta.reshape(1, C) - mean.reshape(1, C) * scale
    return scale, shift


def _bn_relu_kernel(z_ref, s_ref, t_ref, o_ref):
    o_ref[...] = jnp.maximum(z_ref[...] * s_ref[...] + t_ref[...],
                             0.0).astype(o_ref.dtype)


def _bn_relu(z2, scale, shift, out_dtype):
    """Final BatchNorm+ReLU over z2 (N,H,W,C) on a lane-dense (N*H, W*C) slab
    so every store is a wide full-lane write."""
    N, H, W, C = z2.shape
    R, L = N * H, W * C
    zv = z2.reshape(R, L)
    s_row = jnp.tile(scale, (1, W))          # (1, W*C), matches (W, C) flatten
    t_row = jnp.tile(shift, (1, W))

    rows = _pick_rows(R, L, jnp.dtype(jnp.float32).itemsize)
    y = pl.pallas_call(
        _bn_relu_kernel,
        grid=(R // rows,),
        in_specs=[pl.BlockSpec((rows, L), lambda r: (r, 0)),
                  pl.BlockSpec((1, L), lambda r: (0, 0)),
                  pl.BlockSpec((1, L), lambda r: (0, 0))],
        out_specs=pl.BlockSpec((rows, L), lambda r: (r, 0)),
        out_shape=jax.ShapeDtypeStruct((R, L), out_dtype),
        compiler_params=pltpu.CompilerParams(
            dimension_semantics=("parallel",),
            vmem_limit_bytes=_vmem_limit()),
    )(zv, s_row, t_row)
    return y.reshape(N, H, W, C)


@jax.jit
def block_forward(x_nchw, params):
    """NCHW in / NCHW out, matching the PyTorch module's forward."""
    w1, w2, g1, b1, g2, b2 = params
    N, Cin, H, W = x_nchw.shape
    Cout = w1.shape[-1]

    x = jnp.transpose(x_nchw, (0, 2, 3, 1)).astype(jnp.float32)   # NHWC (skip)
    x_bf = x.astype(jnp.bfloat16)                                 # conv1 input
    w1f = w1.reshape(9 * Cin, Cout).astype(jnp.bfloat16)          # (dy,dx,ci)
    w2f = w2.reshape(9 * Cout, Cout).astype(jnp.bfloat16)

    th = _pick_th(H, W, max(Cin, Cout), jnp.dtype(jnp.bfloat16).itemsize)

    # Pass 1: z1 = conv1(x)    (bf16 inter-pass activation) + BN1 partials.
    z1, s1, q1 = _conv3x3_stats(x_bf, w1f, th=th, out_dtype=jnp.bfloat16)
    sc1, sh1 = _finalize_bn(s1, q1, th * W, g1, b1)

    # Pass 2: z2 = conv2(relu(bn1(z1))) + x    (f32) + BN2 partials.
    z2, s2, q2 = _conv3x3_stats(z1, w2f, th=th, out_dtype=jnp.float32,
                                pre_scale=sc1, pre_shift=sh1, residual=x)
    sc2, sh2 = _finalize_bn(s2, q2, th * W, g2, b2)

    # Pass 3: y = relu(bn2(z2)) on a lane-dense slab.
    # TODO(synk): when Blocks are chained, drop this pass and feed (sc2, sh2)
    # into the next Block's conv1 pre-affine (saves two activation-sized HBM
    # transfers per block); a standalone Block must materialise y.
    y = _bn_relu(z2, sc2, sh2, x_nchw.dtype)
    return jnp.transpose(y, (0, 3, 1, 2))


def block_reference(x_nchw, params):
    """Pure-JAX/XLA reference with the kernel's declared precision model:
    conv operands and the inter-pass activation z1 are bf16-rounded,
    accumulation / residual / BatchNorm are f32."""
    w1, w2, g1, b1, g2, b2 = params
    x = jnp.transpose(x_nchw, (0, 2, 3, 1)).astype(jnp.float32)
    dn = jax.lax.conv_dimension_numbers(x.shape, w1.shape, ('NHWC', 'HWIO', 'NHWC'))

    def conv(a, w):
        return jax.lax.conv_general_dilated(
            a.astype(jnp.bfloat16).astype(jnp.float32),
            w.astype(jnp.bfloat16).astype(jnp.float32),
            (1, 1), 'SAME', dimension_numbers=dn,
            precision=jax.lax.Precision.HIGHEST)

    def bn_relu(y, g, b):
        m = jnp.mean(y, axis=(0, 1, 2), keepdims=True)
        v = jnp.mean((y - m) ** 2, axis=(0, 1, 2), keepdims=True)
        y = (y - m) * jax.lax.rsqrt(v + EPS) * g.reshape(1, 1, 1, -1) \
            + b.reshape(1, 1, 1, -1)
        return jnp.maximum(y, 0.0)

    z1 = conv(x, w1)
    z1 = z1.astype(jnp.bfloat16).astype(jnp.float32)   # bf16 inter-pass act.
    y = bn_relu(z1, g1, b1)
    y = conv(y, w2) + x
    y = bn_relu(y, g2, b2)
    return jnp.transpose(y, (0, 3, 1, 2))


def init_params(key, n_input, n_output):
    k1, k2, k3, k4, k5, k6 = jax.random.split(key, 6)
    w1 = 0.1 * jax.random.normal(k1, (3, 3, n_input, n_output), jnp.float32)
    w2 = 0.1 * jax.random.normal(k2, (3, 3, n_output, n_output), jnp.float32)
    g1 = 1.0 + 0.1 * jax.random.normal(k3, (1, n_output), jnp.float32)
    b1 = 0.1 * jax.random.normal(k4, (1, n_output), jnp.float32)
    g2 = 1.0 + 0.1 * jax.random.normal(k5, (1, n_output), jnp.float32)
    b2 = 0.1 * jax.random.normal(k6, (1, n_output), jnp.float32)
    return (w1, w2, g1, b1, g2, b2)


if __name__ == "__main__":
    key = jax.random.PRNGKey(0)
    kx, kp = jax.random.split(key)

    N, C, H, W = 2, 4, 16, 16        # residual add requires n_input == n_output
    x = jax.random.normal(kx, (N, C, H, W), jnp.float32)
    params = init_params(kp, C, C)

    out = jax.block_until_ready(block_forward(x, params))
    ref = block_reference(x, params)

    assert out.shape == ref.shape == (N, C, H, W)
    max_err = float(jnp.max(jnp.abs(out - ref)))
    # Slightly loose bound: the bf16 inter-pass activation (per the review)
    # can flip isolated bf16 roundings of a1 relative to the reference.
    assert jnp.allclose(out, ref, atol=1e-2, rtol=1e-2), max_err

    print("KERNEL_OK")
</pallas_src>

<mosaic_0001>
module attributes {stable_mosaic.version = 11 : i64} {
  func.func @_conv3x3_stats_kernel(%arg0: i32, %arg1: i32, %arg2: memref<1x1x16x4xbf16, #tpu.memory_space<vmem>>, %arg3: memref<1x8x16x4xbf16, #tpu.memory_space<vmem>>, %arg4: memref<1x1x16x4xbf16, #tpu.memory_space<vmem>>, %arg5: memref<36x4xbf16, #tpu.memory_space<vmem>>, %arg6: memref<1x8x16x4xbf16, #tpu.memory_space<vmem>>, %arg7: memref<1x1x1x4xf32, #tpu.memory_space<vmem>>, %arg8: memref<1x1x1x4xf32, #tpu.memory_space<vmem>>) attributes {dimension_semantics = [#tpu.dimension_semantics<parallel>, #tpu.dimension_semantics<parallel>], iteration_bounds = array<i64: 2, 2>, scalar_prefetch = 0 : i64, scratch_operands = 0 : i64, tpu.core_type = #tpu.core_type<tc>, window_params = [{transform_indices = @transform_0, window_bounds = array<i64: 1, 1, 16, 4>}, {transform_indices = @transform_1, window_bounds = array<i64: 1, 8, 16, 4>}, {transform_indices = @transform_2, window_bounds = array<i64: 1, 1, 16, 4>}, {pipeline_mode = #tpu.pipeline_mode<synchronous>, transform_indices = @transform_3, window_bounds = array<i64: 36, 4>}, {transform_indices = @transform_4, window_bounds = array<i64: 1, 8, 16, 4>}, {transform_indices = @transform_5, window_bounds = array<i64: 1, 1, 1, 4>}, {transform_indices = @transform_6, window_bounds = array<i64: 1, 1, 1, 4>}]} {
    %c0 = arith.constant 0 : index
    %c0_0 = arith.constant 0 : index
    %c0_1 = arith.constant 0 : index
    %c0_2 = arith.constant 0 : index
    %0 = vector.load %arg2[%c0, %c0_0, %c0_1, %c0_2] : memref<1x1x16x4xbf16, #tpu.memory_space<vmem>>, vector<1x1x16x4xbf16>
    %c0_3 = arith.constant 0 : index
    %c0_4 = arith.constant 0 : index
    %c0_5 = arith.constant 0 : index
    %c0_6 = arith.constant 0 : index
    %1 = vector.load %arg3[%c0_3, %c0_4, %c0_5, %c0_6] : memref<1x8x16x4xbf16, #tpu.memory_space<vmem>>, vector<1x8x16x4xbf16>
    %c0_7 = arith.constant 0 : index
    %c0_8 = arith.constant 0 : index
    %c0_9 = arith.constant 0 : index
    %c0_10 = arith.constant 0 : index
    %2 = vector.load %arg4[%c0_7, %c0_8, %c0_9, %c0_10] : memref<1x1x16x4xbf16, #tpu.memory_space<vmem>>, vector<1x1x16x4xbf16>
    %3 = tpu.concatenate %0, %1, %2 in 1 : vector<1x1x16x4xbf16>, vector<1x8x16x4xbf16>, vector<1x1x16x4xbf16> -> vector<1x10x16x4xbf16>
    %4 = vector.shape_cast %3 : vector<1x10x16x4xbf16> to vector<10x16x4xbf16>
    %cst = arith.constant 0.000000e+00 : bf16
    %5 = vector.broadcast %cst : bf16 to vector<1x16x4xbf16>
    %c0_i32 = arith.constant 0 : i32
    %6 = arith.cmpi sgt, %arg1, %c0_i32 : i32
    %7 = vector.extract_strided_slice %4 {offsets = [0, 0, 0], sizes = [1, 16, 4], strides = [1, 1, 1]} : vector<10x16x4xbf16> to vector<1x16x4xbf16>
    %8 = arith.select %6, %7, %5 : vector<1x16x4xbf16>
    %9 = vector.extract_strided_slice %4 {offsets = [1, 0, 0], sizes = [8, 16, 4], strides = [1, 1, 1]} : vector<10x16x4xbf16> to vector<8x16x4xbf16>
    %c1_i32 = arith.constant 1 : i32
    %10 = arith.cmpi slt, %arg1, %c1_i32 : i32
    %11 = vector.extract_strided_slice %4 {offsets = [9, 0, 0], sizes = [1, 16, 4], strides = [1, 1, 1]} : vector<10x16x4xbf16> to vector<1x16x4xbf16>
    %12 = arith.select %10, %11, %5 : vector<1x16x4xbf16>
    %13 = tpu.concatenate %8, %9, %12 in 0 : vector<1x16x4xbf16>, vector<8x16x4xbf16>, vector<1x16x4xbf16> -> vector<10x16x4xbf16>
    %cst_11 = arith.constant 0.000000e+00 : bf16
    %14 = vector.broadcast %cst_11 : bf16 to vector<10x1x4xbf16>
    %15 = tpu.concatenate %14, %13, %14 in 1 : vector<10x1x4xbf16>, vector<10x16x4xbf16>, vector<10x1x4xbf16> -> vector<10x18x4xbf16>
    %16 = vector.extract_strided_slice %15 {offsets = [0, 0, 0], sizes = [8, 16, 4], strides = [1, 1, 1]} : vector<10x18x4xbf16> to vector<8x16x4xbf16>
    %17 = vector.shape_cast %16 : vector<8x16x4xbf16> to vector<128x4xbf16>
    %18 = vector.extract_strided_slice %15 {offsets = [0, 1, 0], sizes = [8, 16, 4], strides = [1, 1, 1]} : vector<10x18x4xbf16> to vector<8x16x4xbf16>
    %19 = vector.shape_cast %18 : vector<8x16x4xbf16> to vector<128x4xbf16>
    %20 = vector.extract_strided_slice %15 {offsets = [0, 2, 0], sizes = [8, 16, 4], strides = [1, 1, 1]} : vector<10x18x4xbf16> to vector<8x16x4xbf16>
    %21 = vector.shape_cast %20 : vector<8x16x4xbf16> to vector<128x4xbf16>
    %22 = vector.extract_strided_slice %15 {offsets = [1, 0, 0], sizes = [8, 16, 4], strides = [1, 1, 1]} : vector<10x18x4xbf16> to vector<8x16x4xbf16>
    %23 = vector.shape_cast %22 : vector<8x16x4xbf16> to vector<128x4xbf16>
    %24 = vector.extract_strided_slice %15 {offsets = [1, 1, 0], sizes = [8, 16, 4], strides = [1, 1, 1]} : vector<10x18x4xbf16> to vector<8x16x4xbf16>
    %25 = vector.shape_cast %24 : vector<8x16x4xbf16> to vector<128x4xbf16>
    %26 = vector.extract_strided_slice %15 {offsets = [1, 2, 0], sizes = [8, 16, 4], strides = [1, 1, 1]} : vector<10x18x4xbf16> to vector<8x16x4xbf16>
    %27 = vector.shape_cast %26 : vector<8x16x4xbf16> to vector<128x4xbf16>
    %28 = vector.extract_strided_slice %15 {offsets = [2, 0, 0], sizes = [8, 16, 4], strides = [1, 1, 1]} : vector<10x18x4xbf16> to vector<8x16x4xbf16>
    %29 = vector.shape_cast %28 : vector<8x16x4xbf16> to vector<128x4xbf16>
    %30 = vector.extract_strided_slice %15 {offsets = [2, 1, 0], sizes = [8, 16, 4], strides = [1, 1, 1]} : vector<10x18x4xbf16> to vector<8x16x4xbf16>
    %31 = vector.shape_cast %30 : vector<8x16x4xbf16> to vector<128x4xbf16>
    %32 = vector.extract_strided_slice %15 {offsets = [2, 2, 0], sizes = [8, 16, 4], strides = [1, 1, 1]} : vector<10x18x4xbf16> to vector<8x16x4xbf16>
    %33 = vector.shape_cast %32 : vector<8x16x4xbf16> to vector<128x4xbf16>
    %34 = tpu.concatenate %17, %19, %21, %23, %25, %27, %29, %31, %33 in 1 : vector<128x4xbf16>, vector<128x4xbf16>, vector<128x4xbf16>, vector<128x4xbf16>, vector<128x4xbf16>, vector<128x4xbf16>, vector<128x4xbf16>, vector<128x4xbf16>, vector<128x4xbf16> -> vector<128x36xbf16>
    %c0_12 = arith.constant 0 : index
    %c0_13 = arith.constant 0 : index
    %35 = vector.load %arg5[%c0_12, %c0_13] : memref<36x4xbf16, #tpu.memory_space<vmem>>, vector<36x4xbf16>
    %cst_14 = arith.constant dense<0.000000e+00> : vector<128x4xf32>
    %36 = tpu.matmul %34, %35, %cst_14 {dimension_numbers = #tpu.dot_dimension_numbers<[1], [0], [0], [1], [0, 0, 1, 1], [], []>} : vector<128x36xbf16>, vector<36x4xbf16>, vector<128x4xf32> -> vector<128x4xf32>
    %37 = arith.truncf %36 : vector<128x4xf32> to vector<128x4xbf16>
    %38 = vector.shape_cast %37 : vector<128x4xbf16> to vector<1x8x16x4xbf16>
    %c0_15 = arith.constant 0 : index
    %c0_16 = arith.constant 0 : index
    %c0_17 = arith.constant 0 : index
    %c0_18 = arith.constant 0 : index
    %39 = vector.load %arg6[%c0_15, %c0_16, %c0_17, %c0_18] : memref<1x8x16x4xbf16, #tpu.memory_space<vmem>>, vector<1x8x16x4xbf16>
    tpu.vector_store %arg6[%c0_15, %c0_16, %c0_17, %c0_18], %38 {strides = array<i32>} : memref<1x8x16x4xbf16, #tpu.memory_space<vmem>>, vector<1x8x16x4xbf16>,
    %40 = arith.extf %37 : vector<128x4xbf16> to vector<128x4xf32>
    %cst_19 = arith.constant dense<0.000000e+00> : vector<4xf32>
    %41 = vector.multi_reduction <add>, %40, %cst_19 [0] : vector<128x4xf32> to vector<4xf32>
    %42 = vector.shape_cast %41 : vector<4xf32> to vector<1x4xf32>
    %cst_20 = arith.constant 7.812500e-03 : f32
    %43 = vector.broadcast %cst_20 : f32 to vector<1x4xf32>
    %44 = arith.mulf %42, %43 : vector<1x4xf32>
    %45 = vector.broadcast %44 : vector<1x4xf32> to vector<128x4xf32>
    %46 = arith.subf %40, %45 : vector<128x4xf32>
    %47 = arith.mulf %46, %46 : vector<128x4xf32>
    %cst_21 = arith.constant dense<0.000000e+00> : vector<4xf32>
    %48 = vector.multi_reduction <add>, %47, %cst_21 [0] : vector<128x4xf32> to vector<4xf32>
    %49 = vector.shape_cast %48 : vector<4xf32> to vector<1x4xf32>
    %50 = vector.shape_cast %42 : vector<1x4xf32> to vector<1x1x1x4xf32>
    %c0_22 = arith.constant 0 : index
    %c0_23 = arith.constant 0 : index
    %c0_24 = arith.constant 0 : index
    %c0_25 = arith.constant 0 : index
    %51 = vector.load %arg7[%c0_22, %c0_23, %c0_24, %c0_25] : memref<1x1x1x4xf32, #tpu.memory_space<vmem>>, vector<1x1x1x4xf32>
    tpu.vector_store %arg7[%c0_22, %c0_23, %c0_24, %c0_25], %50 {strides = array<i32>} : memref<1x1x1x4xf32, #tpu.memory_space<vmem>>, vector<1x1x1x4xf32>,
    %52 = vector.shape_cast %49 : vector<1x4xf32> to vector<1x1x1x4xf32>
    %c0_26 = arith.constant 0 : index
    %c0_27 = arith.constant 0 : index
    %c0_28 = arith.constant 0 : index
    %c0_29 = arith.constant 0 : index
    %53 = vector.load %arg8[%c0_26, %c0_27, %c0_28, %c0_29] : memref<1x1x1x4xf32, #tpu.memory_space<vmem>>, vector<1x1x1x4xf32>
    tpu.vector_store %arg8[%c0_26, %c0_27, %c0_28, %c0_29], %52 {strides = array<i32>} : memref<1x1x1x4xf32, #tpu.memory_space<vmem>>, vector<1x1x1x4xf32>,
    return
  }
  func.func @transform_0(%arg0: i32, %arg1: i32) -> (i32, i32, i32, i32) {
    %c8_i32 = arith.constant 8 : i32
    %0 = arith.muli %arg1, %c8_i32 : i32
    %c1_i32 = arith.constant 1 : i32
    %1 = arith.subi %0, %c1_i32 : i32
    %c0_i32 = arith.constant 0 : i32
    %2 = arith.maxsi %1, %c0_i32 : i32
    %c0_i32_0 = arith.constant 0 : i32
    %c0_i32_1 = arith.constant 0 : i32
    %c0_i32_2 = arith.constant 0 : i32
    return %arg0, %2, %c0_i32_0, %c0_i32_1 : i32, i32, i32, i32
  }
  func.func @transform_1(%arg0: i32, %arg1: i32) -> (i32, i32, i32, i32) {
    %c0_i32 = arith.constant 0 : i32
    %c0_i32_0 = arith.constant 0 : i32
    %c0_i32_1 = arith.constant 0 : i32
    return %arg0, %arg1, %c0_i32, %c0_i32_0 : i32, i32, i32, i32
  }
  func.func @transform_2(%arg0: i32, %arg1: i32) -> (i32, i32, i32, i32) {
    %c8_i32 = arith.constant 8 : i32
    %0 = arith.muli %arg1, %c8_i32 : i32
    %c8_i32_0 = arith.constant 8 : i32
    %1 = arith.addi %0, %c8_i32_0 : i32
    %c15_i32 = arith.constant 15 : i32
    %2 = arith.minsi %1, %c15_i32 : i32
    %c0_i32 = arith.constant 0 : i32
    %c0_i32_1 = arith.constant 0 : i32
    %c0_i32_2 = arith.constant 0 : i32
    return %arg0, %2, %c0_i32, %c0_i32_1 : i32, i32, i32, i32
  }
  func.func @transform_3(%arg0: i32, %arg1: i32) -> (i32, i32) {
    %c0_i32 = arith.constant 0 : i32
    %c0_i32_0 = arith.constant 0 : i32
    %c0_i32_1 = arith.constant 0 : i32
    return %c0_i32, %c0_i32_0 : i32, i32
  }
  func.func @transform_4(%arg0: i32, %arg1: i32) -> (i32, i32, i32, i32) {
    %c0_i32 = arith.constant 0 : i32
    %c0_i32_0 = arith.constant 0 : i32
    %c0_i32_1 = arith.constant 0 : i32
    return %arg0, %arg1, %c0_i32, %c0_i32_0 : i32, i32, i32, i32
  }
  func.func @transform_5(%arg0: i32, %arg1: i32) -> (i32, i32, i32, i32) {
    %c0_i32 = arith.constant 0 : i32
    %c0_i32_0 = arith.constant 0 : i32
    %c0_i32_1 = arith.constant 0 : i32
    return %arg0, %arg1, %c0_i32, %c0_i32_0 : i32, i32, i32, i32
  }
  func.func @transform_6(%arg0: i32, %arg1: i32) -> (i32, i32, i32, i32) {
    %c0_i32 = arith.constant 0 : i32
    %c0_i32_0 = arith.constant 0 : i32
    %c0_i32_1 = arith.constant 0 : i32
    return %arg0, %arg1, %c0_i32, %c0_i32_0 : i32, i32, i32, i32
  }
}

module attributes {stable_mosaic.version = 11 : i64} {
  func.func @_conv3x3_stats_kernel(%arg0: i32, %arg1: i32, %arg2: memref<1x1x16x4xbf16, #tpu.memory_space<vmem>>, %arg3: memref<1x8x16x4xbf16, #tpu.memory_space<vmem>>, %arg4: memref<1x1x16x4xbf16, #tpu.memory_space<vmem>>, %arg5: memref<1x8x16x4xf32, #tpu.memory_space<vmem>>, %arg6: memref<36x4xbf16, #tpu.memory_space<vmem>>, %arg7: memref<1x4xf32, #tpu.memory_space<vmem>>, %arg8: memref<1x4xf32, #tpu.memory_space<vmem>>, %arg9: memref<1x8x16x4xf32, #tpu.memory_space<vmem>>, %arg10: memref<1x1x1x4xf32, #tpu.memory_space<vmem>>, %arg11: memref<1x1x1x4xf32, #tpu.memory_space<vmem>>) attributes {dimension_semantics = [#tpu.dimension_semantics<parallel>, #tpu.dimension_semantics<parallel>], iteration_bounds = array<i64: 2, 2>, scalar_prefetch = 0 : i64, scratch_operands = 0 : i64, tpu.core_type = #tpu.core_type<tc>, window_params = [{transform_indices = @transform_0, window_bounds = array<i64: 1, 1, 16, 4>}, {transform_indices = @transform_1, window_bounds = array<i64: 1, 8, 16, 4>}, {transform_indices = @transform_2, window_bounds = array<i64: 1, 1, 16, 4>}, {transform_indices = @transform_3, window_bounds = array<i64: 1, 8, 16, 4>}, {pipeline_mode = #tpu.pipeline_mode<synchronous>, transform_indices = @transform_4, window_bounds = array<i64: 36, 4>}, {pipeline_mode = #tpu.pipeline_mode<synchronous>, transform_indices = @transform_5, window_bounds = array<i64: 1, 4>}, {pipeline_mode = #tpu.pipeline_mode<synchronous>, transform_indices = @transform_6, window_bounds = array<i64: 1, 4>}, {transform_indices = @transform_7, window_bounds = array<i64: 1, 8, 16, 4>}, {transform_indices = @transform_8, window_bounds = array<i64: 1, 1, 1, 4>}, {transform_indices = @transform_9, window_bounds = array<i64: 1, 1, 1, 4>}]} {
    %c0 = arith.constant 0 : index
    %c0_0 = arith.constant 0 : index
    %c0_1 = arith.constant 0 : index
    %c0_2 = arith.constant 0 : index
    %0 = vector.load %arg2[%c0, %c0_0, %c0_1, %c0_2] : memref<1x1x16x4xbf16, #tpu.memory_space<vmem>>, vector<1x1x16x4xbf16>
    %c0_3 = arith.constant 0 : index
    %c0_4 = arith.constant 0 : index
    %c0_5 = arith.constant 0 : index
    %c0_6 = arith.constant 0 : index
    %1 = vector.load %arg3[%c0_3, %c0_4, %c0_5, %c0_6] : memref<1x8x16x4xbf16, #tpu.memory_space<vmem>>, vector<1x8x16x4xbf16>
    %c0_7 = arith.constant 0 : index
    %c0_8 = arith.constant 0 : index
    %c0_9 = arith.constant 0 : index
    %c0_10 = arith.constant 0 : index
    %2 = vector.load %arg4[%c0_7, %c0_8, %c0_9, %c0_10] : memref<1x1x16x4xbf16, #tpu.memory_space<vmem>>, vector<1x1x16x4xbf16>
    %3 = tpu.concatenate %0, %1, %2 in 1 : vector<1x1x16x4xbf16>, vector<1x8x16x4xbf16>, vector<1x1x16x4xbf16> -> vector<1x10x16x4xbf16>
    %4 = vector.shape_cast %3 : vector<1x10x16x4xbf16> to vector<10x16x4xbf16>
    %5 = arith.extf %4 : vector<10x16x4xbf16> to vector<10x16x4xf32>
    %c0_11 = arith.constant 0 : index
    %c0_12 = arith.constant 0 : index
    %6 = vector.load %arg7[%c0_11, %c0_12] : memref<1x4xf32, #tpu.memory_space<vmem>>, vector<1x4xf32>
    %7 = vector.shape_cast %6 : vector<1x4xf32> to vector<1x1x4xf32>
    %8 = vector.broadcast %7 : vector<1x1x4xf32> to vector<10x16x4xf32>
    %9 = arith.mulf %5, %8 : vector<10x16x4xf32>
    %c0_13 = arith.constant 0 : index
    %c0_14 = arith.constant 0 : index
    %10 = vector.load %arg8[%c0_13, %c0_14] : memref<1x4xf32, #tpu.memory_space<vmem>>, vector<1x4xf32>
    %11 = vector.shape_cast %10 : vector<1x4xf32> to vector<1x1x4xf32>
    %12 = vector.broadcast %11 : vector<1x1x4xf32> to vector<10x16x4xf32>
    %13 = arith.addf %9, %12 : vector<10x16x4xf32>
    %cst = arith.constant 0.000000e+00 : f32
    %14 = vector.broadcast %cst : f32 to vector<10x16x4xf32>
    %15 = arith.maximumf %13, %14 : vector<10x16x4xf32>
    %cst_15 = arith.constant 0.000000e+00 : f32
    %16 = vector.broadcast %cst_15 : f32 to vector<1x16x4xf32>
    %c0_i32 = arith.constant 0 : i32
    %17 = arith.cmpi sgt, %arg1, %c0_i32 : i32
    %18 = vector.extract_strided_slice %15 {offsets = [0, 0, 0], sizes = [1, 16, 4], strides = [1, 1, 1]} : vector<10x16x4xf32> to vector<1x16x4xf32>
    %19 = arith.select %17, %18, %16 : vector<1x16x4xf32>
    %20 = vector.extract_strided_slice %15 {offsets = [1, 0, 0], sizes = [8, 16, 4], strides = [1, 1, 1]} : vector<10x16x4xf32> to vector<8x16x4xf32>
    %c1_i32 = arith.constant 1 : i32
    %21 = arith.cmpi slt, %arg1, %c1_i32 : i32
    %22 = vector.extract_strided_slice %15 {offsets = [9, 0, 0], sizes = [1, 16, 4], strides = [1, 1, 1]} : vector<10x16x4xf32> to vector<1x16x4xf32>
    %23 = arith.select %21, %22, %16 : vector<1x16x4xf32>
    %24 = tpu.concatenate %19, %20, %23 in 0 : vector<1x16x4xf32>, vector<8x16x4xf32>, vector<1x16x4xf32> -> vector<10x16x4xf32>
    %25 = arith.truncf %24 : vector<10x16x4xf32> to vector<10x16x4xbf16>
    %cst_16 = arith.constant 0.000000e+00 : bf16
    %26 = vector.broadcast %cst_16 : bf16 to vector<10x1x4xbf16>
    %27 = tpu.concatenate %26, %25, %26 in 1 : vector<10x1x4xbf16>, vector<10x16x4xbf16>, vector<10x1x4xbf16> -> vector<10x18x4xbf16>
    %28 = vector.extract_strided_slice %27 {offsets = [0, 0, 0], sizes = [8, 16, 4], strides = [1, 1, 1]} : vector<10x18x4xbf16> to vector<8x16x4xbf16>
    %29 = vector.shape_cast %28 : vector<8x16x4xbf16> to vector<128x4xbf16>
    %30 = vector.extract_strided_slice %27 {offsets = [0, 1, 0], sizes = [8, 16, 4], strides = [1, 1, 1]} : vector<10x18x4xbf16> to vector<8x16x4xbf16>
    %31 = vector.shape_cast %30 : vector<8x16x4xbf16> to vector<128x4xbf16>
    %32 = vector.extract_strided_slice %27 {offsets = [0, 2, 0], sizes = [8, 16, 4], strides = [1, 1, 1]} : vector<10x18x4xbf16> to vector<8x16x4xbf16>
    %33 = vector.shape_cast %32 : vector<8x16x4xbf16> to vector<128x4xbf16>
    %34 = vector.extract_strided_slice %27 {offsets = [1, 0, 0], sizes = [8, 16, 4], strides = [1, 1, 1]} : vector<10x18x4xbf16> to vector<8x16x4xbf16>
    %35 = vector.shape_cast %34 : vector<8x16x4xbf16> to vector<128x4xbf16>
    %36 = vector.extract_strided_slice %27 {offsets = [1, 1, 0], sizes = [8, 16, 4], strides = [1, 1, 1]} : vector<10x18x4xbf16> to vector<8x16x4xbf16>
    %37 = vector.shape_cast %36 : vector<8x16x4xbf16> to vector<128x4xbf16>
    %38 = vector.extract_strided_slice %27 {offsets = [1, 2, 0], sizes = [8, 16, 4], strides = [1, 1, 1]} : vector<10x18x4xbf16> to vector<8x16x4xbf16>
    %39 = vector.shape_cast %38 : vector<8x16x4xbf16> to vector<128x4xbf16>
    %40 = vector.extract_strided_slice %27 {offsets = [2, 0, 0], sizes = [8, 16, 4], strides = [1, 1, 1]} : vector<10x18x4xbf16> to vector<8x16x4xbf16>
    %41 = vector.shape_cast %40 : vector<8x16x4xbf16> to vector<128x4xbf16>
    %42 = vector.extract_strided_slice %27 {offsets = [2, 1, 0], sizes = [8, 16, 4], strides = [1, 1, 1]} : vector<10x18x4xbf16> to vector<8x16x4xbf16>
    %43 = vector.shape_cast %42 : vector<8x16x4xbf16> to vector<128x4xbf16>
    %44 = vector.extract_strided_slice %27 {offsets = [2, 2, 0], sizes = [8, 16, 4], strides = [1, 1, 1]} : vector<10x18x4xbf16> to vector<8x16x4xbf16>
    %45 = vector.shape_cast %44 : vector<8x16x4xbf16> to vector<128x4xbf16>
    %46 = tpu.concatenate %29, %31, %33, %35, %37, %39, %41, %43, %45 in 1 : vector<128x4xbf16>, vector<128x4xbf16>, vector<128x4xbf16>, vector<128x4xbf16>, vector<128x4xbf16>, vector<128x4xbf16>, vector<128x4xbf16>, vector<128x4xbf16>, vector<128x4xbf16> -> vector<128x36xbf16>
    %c0_17 = arith.constant 0 : index
    %c0_18 = arith.constant 0 : index
    %47 = vector.load %arg6[%c0_17, %c0_18] : memref<36x4xbf16, #tpu.memory_space<vmem>>, vector<36x4xbf16>
    %cst_19 = arith.constant dense<0.000000e+00> : vector<128x4xf32>
    %48 = tpu.matmul %46, %47, %cst_19 {dimension_numbers = #tpu.dot_dimension_numbers<[1], [0], [0], [1], [0, 0, 1, 1], [], []>} : vector<128x36xbf16>, vector<36x4xbf16>, vector<128x4xf32> -> vector<128x4xf32>
    %c0_20 = arith.constant 0 : index
    %c0_21 = arith.constant 0 : index
    %c0_22 = arith.constant 0 : index
    %c0_23 = arith.constant 0 : index
    %49 = vector.load %arg5[%c0_20, %c0_21, %c0_22, %c0_23] : memref<1x8x16x4xf32, #tpu.memory_space<vmem>>, vector<1x8x16x4xf32>
    %50 = vector.shape_cast %49 : vector<1x8x16x4xf32> to vector<128x4xf32>
    %51 = arith.addf %48, %50 : vector<128x4xf32>
    %52 = vector.shape_cast %51 : vector<128x4xf32> to vector<1x8x16x4xf32>
    %c0_24 = arith.constant 0 : index
    %c0_25 = arith.constant 0 : index
    %c0_26 = arith.constant 0 : index
    %c0_27 = arith.constant 0 : index
    %53 = vector.load %arg9[%c0_24, %c0_25, %c0_26, %c0_27] : memref<1x8x16x4xf32, #tpu.memory_space<vmem>>, vector<1x8x16x4xf32>
    tpu.vector_store %arg9[%c0_24, %c0_25, %c0_26, %c0_27], %52 {strides = array<i32>} : memref<1x8x16x4xf32, #tpu.memory_space<vmem>>, vector<1x8x16x4xf32>,
    %cst_28 = arith.constant dense<0.000000e+00> : vector<4xf32>
    %54 = vector.multi_reduction <add>, %51, %cst_28 [0] : vector<128x4xf32> to vector<4xf32>
    %55 = vector.shape_cast %54 : vector<4xf32> to vector<1x4xf32>
    %cst_29 = arith.constant 7.812500e-03 : f32
    %56 = vector.broadcast %cst_29 : f32 to vector<1x4xf32>
    %57 = arith.mulf %55, %56 : vector<1x4xf32>
    %58 = vector.broadcast %57 : vector<1x4xf32> to vector<128x4xf32>
    %59 = arith.subf %51, %58 : vector<128x4xf32>
    %60 = arith.mulf %59, %59 : vector<128x4xf32>
    %cst_30 = arith.constant dense<0.000000e+00> : vector<4xf32>
    %61 = vector.multi_reduction <add>, %60, %cst_30 [0] : vector<128x4xf32> to vector<4xf32>
    %62 = vector.shape_cast %61 : vector<4xf32> to vector<1x4xf32>
    %63 = vector.shape_cast %55 : vector<1x4xf32> to vector<1x1x1x4xf32>
    %c0_31 = arith.constant 0 : index
    %c0_32 = arith.constant 0 : index
    %c0_33 = arith.constant 0 : index
    %c0_34 = arith.constant 0 : index
    %64 = vector.load %arg10[%c0_31, %c0_32, %c0_33, %c0_34] : memref<1x1x1x4xf32, #tpu.memory_space<vmem>>, vector<1x1x1x4xf32>
    tpu.vector_store %arg10[%c0_31, %c0_32, %c0_33, %c0_34], %63 {strides = array<i32>} : memref<1x1x1x4xf32, #tpu.memory_space<vmem>>, vector<1x1x1x4xf32>,
    %65 = vector.shape_cast %62 : vector<1x4xf32> to vector<1x1x1x4xf32>
    %c0_35 = arith.constant 0 : index
    %c0_36 = arith.constant 0 : index
    %c0_37 = arith.constant 0 : index
    %c0_38 = arith.constant 0 : index
    %66 = vector.load %arg11[%c0_35, %c0_36, %c0_37, %c0_38] : memref<1x1x1x4xf32, #tpu.memory_space<vmem>>, vector<1x1x1x4xf32>
    tpu.vector_store %arg11[%c0_35, %c0_36, %c0_37, %c0_38], %65 {strides = array<i32>} : memref<1x1x1x4xf32, #tpu.memory_space<vmem>>, vector<1x1x1x4xf32>,
    return
  }
  func.func @transform_0(%arg0: i32, %arg1: i32) -> (i32, i32, i32, i32) {
    %c8_i32 = arith.constant 8 : i32
    %0 = arith.muli %arg1, %c8_i32 : i32
    %c1_i32 = arith.constant 1 : i32
    %1 = arith.subi %0, %c1_i32 : i32
    %c0_i32 = arith.constant 0 : i32
    %2 = arith.maxsi %1, %c0_i32 : i32
    %c0_i32_0 = arith.constant 0 : i32
    %c0_i32_1 = arith.constant 0 : i32
    %c0_i32_2 = arith.constant 0 : i32
    return %arg0, %2, %c0_i32_0, %c0_i32_1 : i32, i32, i32, i32
  }
  func.func @transform_1(%arg0: i32, %arg1: i32) -> (i32, i32, i32, i32) {
    %c0_i32 = arith.constant 0 : i32
    %c0_i32_0 = arith.constant 0 : i32
    %c0_i32_1 = arith.constant 0 : i32
    return %arg0, %arg1, %c0_i32, %c0_i32_0 : i32, i32, i32, i32
  }
  func.func @transform_2(%arg0: i32, %arg1: i32) -> (i32, i32, i32, i32) {
    %c8_i32 = arith.constant 8 : i32
    %0 = arith.muli %arg1, %c8_i32 : i32
    %c8_i32_0 = arith.constant 8 : i32
    %1 = arith.addi %0, %c8_i32_0 : i32
    %c15_i32 = arith.constant 15 : i32
    %2 = arith.minsi %1, %c15_i32 : i32
    %c0_i32 = arith.constant 0 : i32
    %c0_i32_1 = arith.constant 0 : i32
    %c0_i32_2 = arith.constant 0 : i32
    return %arg0, %2, %c0_i32, %c0_i32_1 : i32, i32, i32, i32
  }
  func.func @transform_3(%arg0: i32, %arg1: i32) -> (i32, i32, i32, i32) {
    %c0_i32 = arith.constant 0 : i32
    %c0_i32_0 = arith.constant 0 : i32
    %c0_i32_1 = arith.constant 0 : i32
    return %arg0, %arg1, %c0_i32, %c0_i32_0 : i32, i32, i32, i32
  }
  func.func @transform_4(%arg0: i32, %arg1: i32) -> (i32, i32) {
    %c0_i32 = arith.constant 0 : i32
    %c0_i32_0 = arith.constant 0 : i32
    %c0_i32_1 = arith.constant 0 : i32
    return %c0_i32, %c0_i32_0 : i32, i32
  }
  func.func @transform_5(%arg0: i32, %arg1: i32) -> (i32, i32) {
    %c0_i32 = arith.constant 0 : i32
    %c0_i32_0 = arith.constant 0 : i32
    %c0_i32_1 = arith.constant 0 : i32
    return %c0_i32, %c0_i32_0 : i32, i32
  }
  func.func @transform_6(%arg0: i32, %arg1: i32) -> (i32, i32) {
    %c0_i32 = arith.constant 0 : i32
    %c0_i32_0 = arith.constant 0 : i32
    %c0_i32_1 = arith.constant 0 : i32
    return %c0_i32, %c0_i32_0 : i32, i32
  }
  func.func @transform_7(%arg0: i32, %arg1: i32) -> (i32, i32, i32, i32) {
    %c0_i32 = arith.constant 0 : i32
    %c0_i32_0 = arith.constant 0 : i32
    %c0_i32_1 = arith.constant 0 : i32
    return %arg0, %arg1, %c0_i32, %c0_i32_0 : i32, i32, i32, i32
  }
  func.func @transform_8(%arg0: i32, %arg1: i32) -> (i32, i32, i32, i32) {
    %c0_i32 = arith.constant 0 : i32
    %c0_i32_0 = arith.constant 0 : i32
    %c0_i32_1 = arith.constant 0 : i32
    return %arg0, %arg1, %c0_i32, %c0_i32_0 : i32, i32, i32, i32
  }
  func.func @transform_9(%arg0: i32, %arg1: i32) -> (i32, i32, i32, i32) {
    %c0_i32 = arith.constant 0 : i32
    %c0_i32_0 = arith.constant 0 : i32
    %c0_i32_1 = arith.constant 0 : i32
    return %arg0, %arg1, %c0_i32, %c0_i32_0 : i32, i32, i32, i32
  }
}

module attributes {stable_mosaic.version = 11 : i64} {
  func.func @_bn_relu_kernel(%arg0: i32, %arg1: memref<8x64xf32, #tpu.memory_space<vmem>>, %arg2: memref<1x64xf32, #tpu.memory_space<vmem>>, %arg3: memref<1x64xf32, #tpu.memory_space<vmem>>, %arg4: memref<8x64xf32, #tpu.memory_space<vmem>>) attributes {dimension_semantics = [#tpu.dimension_semantics<parallel>], iteration_bounds = array<i64: 4>, scalar_prefetch = 0 : i64, scratch_operands = 0 : i64, tpu.core_type = #tpu.core_type<tc>, window_params = [{transform_indices = @transform_0, window_bounds = array<i64: 8, 64>}, {pipeline_mode = #tpu.pipeline_mode<synchronous>, transform_indices = @transform_1, window_bounds = array<i64: 1, 64>}, {pipeline_mode = #tpu.pipeline_mode<synchronous>, transform_indices = @transform_2, window_bounds = array<i64: 1, 64>}, {transform_indices = @transform_3, window_bounds = array<i64: 8, 64>}]} {
    %c0 = arith.constant 0 : index
    %c0_0 = arith.constant 0 : index
    %0 = vector.load %arg1[%c0, %c0_0] : memref<8x64xf32, #tpu.memory_space<vmem>>, vector<8x64xf32>
    %c0_1 = arith.constant 0 : index
    %c0_2 = arith.constant 0 : index
    %1 = vector.load %arg2[%c0_1, %c0_2] : memref<1x64xf32, #tpu.memory_space<vmem>>, vector<1x64xf32>
    %2 = vector.broadcast %1 : vector<1x64xf32> to vector<8x64xf32>
    %3 = arith.mulf %0, %2 : vector<8x64xf32>
    %c0_3 = arith.constant 0 : index
    %c0_4 = arith.constant 0 : index
    %4 = vector.load %arg3[%c0_3, %c0_4] : memref<1x64xf32, #tpu.memory_space<vmem>>, vector<1x64xf32>
    %5 = vector.broadcast %4 : vector<1x64xf32> to vector<8x64xf32>
    %6 = arith.addf %3, %5 : vector<8x64xf32>
    %cst = arith.constant 0.000000e+00 : f32
    %7 = vector.broadcast %cst : f32 to vector<8x64xf32>
    %8 = arith.maximumf %6, %7 : vector<8x64xf32>
    %c0_5 = arith.constant 0 : index
    %c0_6 = arith.constant 0 : index
    %9 = vector.load %arg4[%c0_5, %c0_6] : memref<8x64xf32, #tpu.memory_space<vmem>>, vector<8x64xf32>
    tpu.vector_store %arg4[%c0_5, %c0_6], %8 {strides = array<i32>} : memref<8x64xf32, #tpu.memory_space<vmem>>, vector<8x64xf32>,
    return
  }
  func.func @transform_0(%arg0: i32) -> (i32, i32) {
    %c0_i32 = arith.constant 0 : i32
    %c0_i32_0 = arith.constant 0 : i32
    return %arg0, %c0_i32 : i32, i32
  }
  func.func @transform_1(%arg0: i32) -> (i32, i32) {
    %c0_i32 = arith.constant 0 : i32
    %c0_i32_0 = arith.constant 0 : i32
    %c0_i32_1 = arith.constant 0 : i32
    return %c0_i32, %c0_i32_0 : i32, i32
  }
  func.func @transform_2(%arg0: i32) -> (i32, i32) {
    %c0_i32 = arith.constant 0 : i32
    %c0_i32_0 = arith.constant 0 : i32
    %c0_i32_1 = arith.constant 0 : i32
    return %c0_i32, %c0_i32_0 : i32, i32
  }
  func.func @transform_3(%arg0: i32) -> (i32, i32) {
    %c0_i32 = arith.constant 0 : i32
    %c0_i32_0 = arith.constant 0 : i32
    return %arg0, %c0_i32 : i32, i32
  }
}

</mosaic_0001>

<bundles_post_ra>
// kernel: block_forward.5
= control target key start
LH: loop header
LB: loop body
LE: loop exit
PB: predicated region body
PF: predicated region fallthrough
CT: control target
= control target key end

     0   :  { %s262_s12 = smov 0   ;;  %s298_s0 = inlined_call_operand.vmem [shape: f32[32,64], index: 0, kind: input, shape index: {}]   ;;  %s299_s1 = inlined_call_operand.vmem [shape: f32[1,64], index: 1, kind: input, shape index: {}]   ;;  %s300_s2 = inlined_call_operand.vmem [shape: f32[1,64], index: 2, kind: input, shape index: {}]   ;;  %s301_s3 = inlined_call_operand.vmem [shape: f32[32,64], index: 3, kind: output, shape index: {}]  }
   0x1 LB: > { %s239_s13 = sadd.s32 4294967295, %s264_s12   ;;  %p243_p0 = scmp.ge.s32.totalorder %s264_s12, 1  ;;  %s264_s12 = sphi %s262_s12, %s13_s12  }
   0x2   : > { %p136_p1 = scmp.lt.s32.totalorder %s264_s12, 5 }
   0x4   : > { %p137_p2 = pnand %p243_p0, %p136_p1 }
   0x5   : > { %p158_p3 = scmp.lt.s32.totalorder (!%p137_p2), %s239_s13, 3  ;;  %v246_v0 = vld [vmem:[%s299_s1] ss:$0 sm:$0xff] (!%p137_p2)  ;;  %vm184_vm0 = vcmask (!%p137_p2), 523264  }
   0x6   : > { %140 = sbr.rel (%p137_p2) target bundleno = 24 (0x18), region = 32  ;;  %v247_v2 = vld [vmem:[%s300_s2] ss:$0 sm:$0xff] (!%p137_p2) }
   0xd   : > { %s303_s13 = smov (!%p158_p3, %s239_s13), 3 }
   0xe   : > { %s244_s14 = sshll.u32 %s303_s13, 3 }
   0xf   : > { %s161_s19 = scalar_lea.vmem %s298_s0, %s244_s14  ;;  %s165_s24 = scalar_lea.vmem %s301_s3, %s244_s14 }
  0x10   : > { %v166_v1 = vld [vmem:[%s161_s19] sm:$0xff] }
  0x11   : > { %v174_v3 = vmul.f32 %v246_v0, %v166_v1 }
  0x13   : > { %v182_v4 = vadd.f32 %v247_v2, %v174_v3 }
  0x15   : > { %v183_v5 = vmax.f32 %v182_v4, 0.0 }
  0x17   : > { %185 = vst.msk [vmem:[%s165_s24] sm:$0xff] %vm184_vm0, %v183_v5 }
  0x18 PF: > { %s13_s12 = sadd.s32 1, %s264_s12  }
  0x19   : > { %p10_p4 = scmp.ge.s32.totalorder %s13_s12, 6  }
  0x1b   :  { %12 = sbr.rel (!%p10_p4) target bundleno = 1 (0x1), region = 62 }

// kernel: block_forward.3
= control target key start
LH: loop header
LB: loop body
LE: loop exit
PB: predicated region body
PF: predicated region fallthrough
CT: control target
= control target key end

     0   :  { %s1935_s21 = smov 0   ;;  %s1937_s22 = smov 0   ;;  %s2535_s0 = inlined_call_operand.vmem [shape: bf16[2,16,16,4], index: 0, kind: input, shape index: {}, may-alias: {0,1,2}]   ;;  %s2536_s1 = inlined_call_operand.vmem [shape: bf16[2,16,16,4], index: 1, kind: input, shape index: {}, may-alias: {0,1,2}]   ;;  %s2537_s2 = inlined_call_operand.vmem [shape: bf16[2,16,16,4], index: 2, kind: input, shape index: {}, may-alias: {0,1,2}]   ;;  %s2538_s3 = inlined_call_operand.vmem [shape: bf16[36,4], index: 3, kind: input, shape index: {}]   ;;  %s2539_s4 = inlined_call_operand.vmem [shape: bf16[2,16,16,4], index: 4, kind: output, shape index: {0}]   ;;  %s2540_s5 = inlined_call_operand.vmem [shape: f32[2,2,1,4], index: 5, kind: output, shape index: {1}]   ;;  %s2541_s6 = inlined_call_operand.vmem [shape: f32[2,2,1,4], index: 6, kind: output, shape index: {2}]  }
   0x1   :  { %s1939_s23 = smov 0   ;;  %s1941_s24 = smov 0  }
   0x2   :  { %s1943_s25 = smov 0  }
   0x3 LB: > { %s26_s26 = sadd.s32 1, %s1882_s23  ;;  %s29_s27 = sadd.s32 1, %s1886_s24  ;;  %s1890_s25 = sphi %s1943_s25, %s17_s25   ;;  %s1886_s24 = sphi %s1941_s24, %s2550_s24   ;;  %s1882_s23 = sphi %s1939_s23, %s2549_s23   ;;  %s1878_s22 = sphi %s1937_s22, %s2548_s22   ;;  %s1874_s21 = sphi %s1935_s21, %s2547_s21  }
   0x4   : > { %p27_p0 = scmp.ge.s32.totalorder %s26_s26, 2  ;;  %p1667_p1 = scmp.ge.s32.totalorder %s1890_s25, 1 }
   0x5   : > { %p307_p2 = scmp.lt.s32.totalorder %s1890_s25, 5 }
   0x6   : > { %s2552_s26 = smov (%p27_p0, %s26_s26), 0  ;;  %s2554_s27 = smov (!%p27_p0, %s29_s27), %s1886_s24 }
   0x7   : > { %p308_p3 = pnand %p1667_p1, %p307_p2  ;;  %p31_p4 = scmp.ge.s32.totalorder %s2554_s27, 2 }
   0x8   : > { %s1968_s28 = sshll.u32 (!%p308_p3), %s1874_s21, 3  ;;  %p391_p5 = scmp.lt.s32.totalorder (!%p308_p3), %s1878_s22, 1  ;;  %vm630_vm0 = vcmask (!%p308_p3), 1040384   ;;  %vm631_vm1 = vsmask.f32 (!%p308_p3), 256  ;;  %vm766_vm4 = vcmask (!%p308_p3), 1046528  }
   0x9   : > { %s2556_s27 = smov (%p31_p4, %s2554_s27), 0  ;;  %311 = sbr.rel (%p308_p3) target bundleno = 564 (0x234), region = 36 }
   0xa   : > { %p407_p6 = scmp.lt.s32.totalorder (!%p308_p3), %s1968_s28, 15  ;;  %s1669_s13 = sadd.s32 (!%p308_p3), 4294967295, %s1968_s28  ;;  %vm1994_vm2 = vmand (!%p308_p3), %vm630_vm0, %vm631_vm1  ;;  %vm653_vm3 = vsmask.f32 (!%p308_p3), 7424  ;;  %v1849_v55 = vld [vmem:[%s2538_s3] sm:$0xff] (!%p308_p3)   ;;  %vm1126_vm7 = vcmask (!%p308_p3), 1041408  }
   0xb   : > { %p389_p7 = scmp.gt.s32.totalorder (!%p308_p3), %s1669_s13, 0  ;;  %p1670_p8 = scmp.lt.s32.totalorder (!%p308_p3), %s1669_s13, 15  ;;  %1763 = vmatprep.subr.bf16.mxu0 (!%p308_p3), %v1849_v55  ;;  %1785 = vmatprep.subr.bf16.mxu1 (!%p308_p3), %v1849_v55  ;;  %vm953_vm8 = vcmask (!%p308_p3), 31744   ;;  %vm970_vm9 = vcmask (!%p308_p3), 64512   ;;  %vm987_vm10 = vcmask (!%p308_p3), 97280   ;;  %vm1004_vm11 = vcmask (!%p308_p3), 130048  }
   0xc   : > { %p478_p9 = scmp.gt.s32.totalorder (!%p308_p3), %s1874_s21, 0  ;;  %s1892_s17 = smov (!%p308_p3), 12   ;;  %1764 = vmatpush3.bf16.msra.mxu0 (!%p308_p3), %v1849_v55  ;;  %1788 = vmatpush3.bf16.msra.mxu1 (!%p308_p3), %v1849_v55  ;;  %vm1021_vm12 = vcmask (!%p308_p3), 162816   ;;  %vm1038_vm13 = vcmask (!%p308_p3), 195584   ;;  %vm1055_vm14 = vcmask (!%p308_p3), 228352   ;;  %vm1072_vm15 = vcmask (!%p308_p3), 261120  }
   0xd   : > { %s1893_s10 = smov (!%p308_p3), 24   ;;  %s416_s11 = sadd.s32 (!%p308_p3), 8, %s1968_s28  ;;  %vm1109_vm0 = vcmask (!%p308_p3), 293888   ;;  %vm1291_vm1 = vcmask (!%p308_p3), 27648  }
   0xe   : > { %p2039_p10 = scmp.lt.s32.totalorder (!%p308_p3), %s416_s11, 15  ;;  %p445_p11 = scmp.lt.s32.totalorder (!%p308_p3), %s1874_s21, 1 }
   0xf   : > { %s1896_s20 = smov (!%p308_p3), 4  }
  0x10   : > { %s2558_s22 = smov (!%p391_p5, %s1878_s22), 1  ;;  %s2562_s11 = smov (!%p2039_p10, %s416_s11), 15 }
  0x11   : > { %s408_s29 = scalar_select %p407_p6, %s1968_s28, 15 }
  0x12   : > { %s1975_s30 = sshll.u32 %s2558_s22, 5  ;;  %s2564_s11 = smov (!%p2039_p10, %s2562_s11), 15 }
  0x13   : > { %s1679_s7 = sshll.u32 %s408_s29, 1  ;;  %s2084_s29 = sshll.u32 %s2564_s11, 1 }
  0x14   : > { %s1978_s8 = sadd.s32 %s1679_s7, %s1975_s30 }
  0x15   : > { %s1681_s9 = sshll.u32 %s1978_s8, 2 }
  0x16   : > { %s1986_s12 = scalar_lea.vmem %s2536_s1, %s1681_s9 }
  0x17   : > { %v1841_v0 = vld [vmem:[%s1986_s12 + $0x8] sm:$0xff]   ;;  %v1842_v1 = vld [vmem:[%s1986_s12] sm:$0xff]   ;;  %v1843_v6 = vld [vmem:[%s1986_s12 + $0x10] sm:$0xff]   ;;  %s390_s14 = scalar_select %p389_p7, %s1669_s13, 0 }
  0x18   : > { %v555_v2 = vshrl.u32 %v1841_v0, 16  ;;  %v558_v3 = vshll.u32 %v1841_v0, 16  ;;  %v548_v4 = vshrl.u32 %v1842_v1, 16  ;;  %v551_v5 = vshll.u32 %v1842_v1, 16  ;;  %s479_s15 = scalar_select %p478_p9, 1, 0 }
  0x19   : > { %v562_v10 = vshrl.u32 %v1843_v6, 16  ;;  %v565_v11 = vshll.u32 %v1843_v6, 16  ;;  %s2560_s14 = smov (!%p1670_p8, %s390_s14), 15  ;;  %v2034_v41 = vld [vmem:[%s1986_s12 + $0x18] sm:$0xff]   ;;  %v2037_v42 = vld [vmem:[%s1986_s12 + $0x28] sm:$0xff]   ;;  %s1894_s13 = smov 8  }
  0x1a   : > { %v557_v7 = vrot.slane %v555_v2, 7  ;;  %v550_v9 = vrot.slane %v548_v4, 7  ;;  %s1675_s16 = sshll.u32 %s2560_s14, 1  ;;  %v480_v19 = vstv %s479_s15  ;;  %s1693_s14 = sshll.u32 %s2558_s22, 1  ;;  %v569_v53 = vshrl.u32 %v2034_v41, 16  ;;  %v2082_v63 = vld [vmem:[%s1986_s12 + $0x30] sm:$0xff]  }
  0x1b   : > { %v564_v14 = vrot.slane %v562_v10, 7  ;;  %s397_s18 = sadd.s32 %s1975_s30, %s1675_s16  ;;  %vm481_vm5 = vcmp.eq.s32.totalorder %v480_v19, 1  ;;  %s1895_s15 = smov 20   ;;  %v583_v54 = vshrl.u32 %v2037_v42, 16  ;;  %v572_v58 = vshll.u32 %v2034_v41, 16  ;;  %v1850_v10 = vld [vmem:[%s2538_s3 + $0x8] sm:$0xff]  }
  0x1c   : > { %v560_v12 = vor.u32 %v558_v3, %v557_v7  ;;  %v553_v13 = vor.u32 %v551_v5, %v550_v9  ;;  %v644_v15 = vsel %vm1994_vm2, %v550_v9, 0  ;;  %v645_v22 = vsel %vm1994_vm2, %v557_v7, 0  ;;  %s1677_s19 = sshll.u32 %s397_s18, 2  ;;  %v2091_v7 = vld [vmem:[%s1986_s12 + $0x20] sm:$0xff]   ;;  %1765 = vmatprep.subr.bf16.mxu0 %v1850_v10  ;;  %1786 = vmatprep.subr.bf16.mxu1 %v1850_v10  ;;  %s1898_s16 = smov 28  }
  0x1d   : > { %v567_v18 = vor.u32 %v565_v11, %v564_v14  ;;  %v771_v21 = vrot.slane %v644_v15, 1  ;;  %v674_v26 = vshll.u32 %v644_v15, 16  ;;  %s399_s7 = scalar_lea.vmem %s2535_s0, %s1677_s19  ;;  %v774_v34 = vrot.slane %v645_v22, 1  ;;  %1766 = vmatpush3.bf16.msra.mxu0 %v1850_v10  ;;  %1789 = vmatpush3.bf16.msra.mxu1 %v1850_v10 }
  0x1e   : > { %v2002_v16 = vsel %vm1994_vm2, 0, %v560_v12  ;;  %v2008_v17 = vsel %vm1994_vm2, 0, %v553_v13  ;;  %v458_v28 = vld [vmem:[%s399_s7] sm:$0xf]  ;;  %v459_v29 = vld [vmem:[%s399_s7 + $0x4] sm:$0xf]  ;;  %s425_s7 = sadd.s32 %s2084_s29, %s1975_s30 }
  0x1f   : > { %859 = vrot.lane.b32.xlu1 %v2002_v16, %s1892_s17  ;;  %857 = vrot.lane.b32.xlu0 %v2008_v17, %s1892_s17  ;;  %v770_v20 = vrot.slane %v2008_v17, 1  ;;  %v669_v23 = vshll.u32 %v2008_v17, 16  ;;  %v2019_v24 = vsel %vm1994_vm2, 0, %v567_v18  ;;  %v667_v25 = vshrl.u32 %v2008_v17, 16  ;;  %s446_s22 = scalar_select %p445_p11, %s1874_s21, 1 }
  0x20   : > { %v482_v30 = vsel %vm481_vm5, %v458_v28, 0  ;;  %v483_v31 = vsel %vm481_vm5, %v459_v29, 0  ;;  %v773_v33 = vrot.slane %v2002_v16, 1  ;;  %v676_v37 = vrot.slane %v674_v26, 1  ;;  %s485_s30 = scalar_select %p445_p11, 1, 0 }
  0x21   : > { %v671_v27 = vrot.slane %v669_v23, 1  ;;  %v772_v32 = vsel %vm766_vm4, %v770_v20, %v771_v21  ;;  %v1695_v35 = vcombine.low %v482_v30, %v483_v31  ;;  %v681_v38 = vshll.u32 %v2002_v16, 16  ;;  %s2072_s19 = sadd.s32 %s1693_s14, %s446_s22  ;;  %s1897_s14 = smov 16  }
  0x22   : > { %v686_v43 = vshll.u32 %v645_v22, 16  ;;  %v2048_v44 = vsel %vm766_vm4, %v773_v33, %v774_v34  ;;  %v679_v46 = vshrl.u32 %v2002_v16, 16  ;;  %v646_v49 = vsel %vm1994_vm2, %v564_v14, 0  ;;  %s1688_s22 = sshll.u32 %s425_s7, 2  ;;  %s1899_s21 = smov 32  }
  0x23   : > { %907 = vrot.lane.b32.xlu1 %v2019_v24, %s1893_s10  ;;  %905 = vrot.lane.b32.xlu0 %v2002_v16, %s1893_s10  ;;  %v672_v36 = vor.u32 %v671_v27, %v667_v25  ;;  %v541_v39 = vshrl.u32 %v1695_v35, 16  ;;  %v544_v40 = vshll.u32 %v1695_v35, 16  ;;  %v683_v48 = vrot.slane %v681_v38, 1  ;;  %v1848_v35 = vld [vmem:[%s1986_s12 + $0x38] sm:$0xff]   ;;  %s427_s29 = scalar_lea.vmem %s2537_s2, %s1688_s22 }
  0x24   : > { %v693_v50 = vshll.u32 %v2019_v24, 16  ;;  %v688_v57 = vrot.slane %v686_v43, 1  ;;  %v691_v60 = vshrl.u32 %v2019_v24, 16  ;;  %v698_v61 = vshll.u32 %v646_v49, 16 }
  0x25   : > { %v543_v45 = vrot.slane %v541_v39, 7  ;;  %v677_v47 = vsel %vm653_vm3, %v672_v36, %v676_v37  ;;  %v776_v62 = vrot.slane %v2019_v24, 1  ;;  %v684_v1 = vor.u32 %v683_v48, %v679_v46 }
  0x26   : > { %v695_v2 = vrot.slane %v693_v50, 1  ;;  %v777_v5 = vrot.slane %v646_v49, 1  ;;  %v571_v6 = vrot.slane %v569_v53, 7  ;;  %v585_v9 = vrot.slane %v583_v54, 7 }
  0x27   : > { %843 = vrot.lane.b32.xlu1 %v772_v32, %s1894_s13  ;;  %889 = vrot.lane.b32.xlu0 %v772_v32, %s1895_s15  ;;  %v546_v51 = vor.u32 %v544_v40, %v543_v45  ;;  %v643_v52 = vsel %vm1994_vm2, %v543_v45, 0  ;;  %v586_v14 = vshll.u32 %v2037_v42, 16  ;;  %v590_v15 = vshrl.u32 %v2082_v63, 16 }
  0x28   : > { %v768_v56 = vrot.slane %v643_v52, 1  ;;  %v662_v4 = vshll.u32 %v643_v52, 16  ;;  %v689_v18 = vsel %vm653_vm3, %v684_v1, %v688_v57  ;;  %v696_v19 = vor.u32 %v695_v2, %v691_v60  ;;  %v477_v57 = vld [vmem:[%s427_s29 + $0x4] sm:$0xf] }
  0x29   : > { %v2077_v59 = vsel %vm1994_vm2, 0, %v546_v51  ;;  %v700_v20 = vrot.slane %v698_v61, 1  ;;  %v588_v21 = vor.u32 %v586_v14, %v585_v9  ;;  %v2104_v22 = vsel %vm766_vm4, %v776_v62, %v777_v5 }
  0x2a   : > { %v767_v0 = vrot.slane %v2077_v59, 1  ;;  %v657_v3 = vshll.u32 %v2077_v59, 16  ;;  %v655_v12 = vshrl.u32 %v2077_v59, 16  ;;  %v574_v23 = vor.u32 %v572_v58, %v571_v6 }
  0x2b   : > { %891 = vrot.lane.b32.xlu1 %v2048_v44, %s1895_s15  ;;  %827 = vrot.lane.b32.xlu0 %v677_v47, %s1896_s20  ;;  %v576_v25 = vshrl.u32 %v2091_v7, 16  ;;  %v649_v26 = vsel %vm1994_vm2, %v585_v9, 0  ;;  %v664_v28 = vrot.slane %v662_v4, 1  ;;  %v2111_v29 = vsel %vm1994_vm2, %v571_v6, 0 }
  0x2c   : > { %v769_v11 = vsel %vm766_vm4, %v767_v0, %v768_v56  ;;  %v659_v13 = vrot.slane %v657_v3, 1  ;;  %v579_v30 = vshll.u32 %v2091_v7, 16  ;;  %v2121_v31 = vsel %vm1994_vm2, 0, %v588_v21  ;;  %v476_v56 = vld [vmem:[%s427_s29] sm:$0xf] }
  0x2d   : > { %v734_v32 = vshll.u32 %v649_v26, 16  ;;  %v786_v33 = vrot.slane %v649_v26, 1  ;;  %v592_v34 = vrot.slane %v590_v15, 7  ;;  %v2125_v36 = vsel %vm653_vm3, %v696_v19, %v700_v20 }
  0x2e   : > { %v660_v27 = vor.u32 %v659_v13, %v655_v12  ;;  %v727_v37 = vshrl.u32 %v2121_v31, 16  ;;  %v729_v38 = vshll.u32 %v2121_v31, 16  ;;  %v785_v39 = vrot.slane %v2121_v31, 1 }
  0x2f   : > { %873 = vrot.lane.b32.xlu0 %v677_v47, %s1897_s14  ;;  %841 = vrot.lane.b32.xlu1 %v769_v11, %s1894_s13  ;;  %v2134_v40 = vsel %vm1994_vm2, 0, %v574_v23  ;;  %v710_v41 = vshll.u32 %v2111_v29, 16  ;;  %v593_v42 = vshll.u32 %v2082_v63, 16  ;;  %v650_v43 = vsel %vm1994_vm2, %v592_v34, 0 }
  0x30   : > { %v703_v45 = vshrl.u32 %v2134_v40, 16  ;;  %v731_v46 = vrot.slane %v729_v38, 1  ;;  %v736_v47 = vrot.slane %v734_v32, 1  ;;  %v2145_v48 = vsel %vm766_vm4, %v785_v39, %v786_v33  ;;  %v1851_v32 = vld [vmem:[%s2538_s3 + $0x10] ss:$0 sps:$4 sm:$0x33]  }
  0x31   : > { %v665_v49 = vsel %vm653_vm3, %v660_v27, %v664_v28  ;;  %v595_v50 = vor.u32 %v593_v42, %v592_v34  ;;  %v597_v51 = vshrl.u32 %v1848_v35, 16  ;;  %v600_v52 = vshll.u32 %v1848_v35, 16  ;;  %1791 = vmatprep.subr.msk.bf16.mxu0 %vm1126_vm7, %v1851_v32  ;;  %1792 = vmatprep.subr.msk.bf16.mxu1 %vm1126_vm7, %v1851_v32 }
  0x32   : > { %v732_v53 = vor.u32 %v731_v46, %v727_v37  ;;  %v746_v54 = vshll.u32 %v650_v43, 16  ;;  %v789_v55 = vrot.slane %v650_v43, 1  ;;  %v486_v58 = vstv %s485_s30 }
  0x33   : > { %921 = vrot.lane.b32.xlu0 %v689_v18, %s1898_s16  ;;  %875 = vrot.lane.b32.xlu1 %v689_v18, %s1897_s14  ;;  %v705_v60 = vshll.u32 %v2134_v40, 16  ;;  %v2155_v61 = vsel %vm1994_vm2, 0, %v595_v50  ;;  %v599_v62 = vrot.slane %v597_v51, 7  ;;  %vm2157_vm6 = vcmp.eq.s32.totalorder %v486_v58, 1 }
  0x34   : > { %v2162_v0 = vsel %vm653_vm3, %v732_v53, %v736_v47  ;;  %v739_v1 = vshrl.u32 %v2155_v61, 16  ;;  %v741_v2 = vshll.u32 %v2155_v61, 16  ;;  %v788_v3 = vrot.slane %v2155_v61, 1 }
  0x35   : > { %v602_v4 = vor.u32 %v600_v52, %v599_v62  ;;  %v651_v5 = vsel %vm1994_vm2, %v599_v62, 0  ;;  %v488_v6 = vsel %vm2157_vm6, %v476_v56, 0  ;;  %v489_v9 = vsel %vm2157_vm6, %v477_v57, 0 }
  0x36   : > { %v743_v10 = vrot.slane %v741_v2, 1  ;;  %v748_v11 = vrot.slane %v746_v54, 1  ;;  %v2176_v12 = vsel %vm766_vm4, %v788_v3, %v789_v55  ;;  %v799_v13 = vshll.u32 %v651_v5, 16 }
  0x37   : > { %937 = vrot.lane.b32.xlu0 %v2048_v44, %s1899_s21  ;;  %923 = vrot.lane.b32.xlu1 %v2125_v36, %s1898_s16  ;;  %v578_v14 = vrot.slane %v576_v25, 7  ;;  %v2180_v15 = vsel %vm1994_vm2, 0, %v602_v4  ;;  %v1704_v19 = vcombine.low %v488_v6, %v489_v9  ;;  %v707_v20 = vrot.slane %v705_v60, 1 }
  0x38   : > { %v744_v21 = vor.u32 %v743_v10, %v739_v1  ;;  %v792_v23 = vshrl.u32 %v2180_v15, 16  ;;  %v794_v26 = vshll.u32 %v2180_v15, 16  ;;  %v805_v25 = vrot.slane %v2180_v15, 1 }
  0x39   : > { %v604_v27 = vshrl.u32 %v1704_v19, 16  ;;  %v607_v28 = vshll.u32 %v1704_v19, 16  ;;  %v801_v35 = vrot.slane %v799_v13, 1  ;;  %v581_v37 = vor.u32 %v579_v30, %v578_v14 }
  0x3a   : > { %v2193_v33 = vsel %vm653_vm3, %v744_v21, %v748_v11  ;;  %v796_v34 = vrot.slane %v794_v26, 1  ;;  %v712_v42 = vrot.slane %v710_v41, 1  ;;  %v708_v46 = vor.u32 %v707_v20, %v703_v45 }
  0x3b   : > { %829 = vrot.lane.b32.xlu1 %v689_v18, %s1896_s20  ;;  %825 = vrot.lane.b32.xlu0 %v665_v49, %s1896_s20  ;;  %v806_v18 = vrot.slane %v651_v5, 1  ;;  %v606_v39 = vrot.slane %v604_v27, 7  ;;  %v1128_v7 = vsel %vm1126_vm7, %v1851_v32, 0  ;;  %v2211_v41 = vsel %vm1994_vm2, 0, %v581_v37 }
  0x3c   : > { %v797_v43 = vor.u32 %v796_v34, %v792_v23  ;;  %1768 = vmatpush3.bf16.msra.mxu0 %v1128_v7  ;;  %1790 = vmatpush3.bf16.msra.mxu1 %v1128_v7  ;;  %v713_v54 = vsel %vm653_vm3, %v708_v46, %v712_v42  ;;  %v779_v55 = vrot.slane %v2134_v40, 1  ;;  %v780_v56 = vrot.slane %v2111_v29, 1 }
  0x3d   : > { %v2198_v38 = vsel %vm766_vm4, %v805_v25, %v806_v18  ;;  %v609_v47 = vor.u32 %v607_v28, %v606_v39  ;;  %v652_v49 = vsel %vm1994_vm2, %v606_v39, 0  ;;  %v717_v57 = vshll.u32 %v2211_v41, 16 }
  0x3e   : > { %v2207_v30 = vsel %vm653_vm3, %v797_v43, %v801_v35  ;;  %v816_v50 = vshll.u32 %v652_v49, 16  ;;  %v823_v51 = vrot.slane %v652_v49, 1  ;;  %v648_v63 = vsel %vm1994_vm2, %v578_v14, 0 }
  0x3f   : > { %831 = vrot.lane.b32.xlu1 %v2125_v36, %s1896_s20  ;;  %939 = vrot.lane.b32.xlu0 %v2104_v22, %s1899_s21  ;;  %v781_v2 = vsel %vm766_vm4, %v779_v55, %v780_v56  ;;  %v715_v3 = vshrl.u32 %v2211_v41, 16  ;;  %v719_v29 = vrot.slane %v717_v57, 1  ;;  %v722_v4 = vshll.u32 %v648_v63, 16 }
  0x40   : > { %v818_v60 = vrot.slane %v816_v50, 1  ;;  %v782_v9 = vrot.slane %v2211_v41, 1  ;;  %v783_v10 = vrot.slane %v648_v63, 1 }
  0x41   : > { %v720_v8 = vor.u32 %v719_v29, %v715_v3  ;;  %v724_v6 = vrot.slane %v722_v4, 1 }
  0x43   : > { %847 = vrot.lane.b32.xlu1 %v2104_v22, %s1894_s13  ;;  %845 = vrot.lane.b32.xlu0 %v2048_v44, %s1894_s13  ;;  %v2215_v44 = vsel %vm1994_vm2, 0, %v609_v47  ;;  %vm1431_vm2 = vcmask 24576  }
  0x44   : > { %v809_v45 = vshrl.u32 %v2215_v44, 16  ;;  %v811_v52 = vshll.u32 %v2215_v44, 16  ;;  %v822_v53 = vrot.slane %v2215_v44, 1 }
  0x46   : > { %v813_v58 = vrot.slane %v811_v52, 1  ;;  %v824_v62 = vsel %vm766_vm4, %v822_v53, %v823_v51 }
  0x47   : > { %863 = vrot.lane.b32.xlu1 %v2134_v40, %s1892_s17  ;;  %861 = vrot.lane.b32.xlu0 %v2019_v24, %s1892_s17 }
  0x48   : > { %v814_v1 = vor.u32 %v813_v58, %v809_v45 }
  0x4a   : > { %v819_v5 = vsel %vm653_vm3, %v814_v1, %v818_v60 }
  0x4b   : > { %879 = vrot.lane.b32.xlu1 %v713_v54, %s1897_s14  ;;  %877 = vrot.lane.b32.xlu0 %v2125_v36, %s1897_s14  ;;  %v725_v36 = vsel %vm653_vm3, %v720_v8, %v724_v6 }
  0x4f   : > { %895 = vrot.lane.b32.xlu1 %v781_v2, %s1895_s15  ;;  %893 = vrot.lane.b32.xlu0 %v2104_v22, %s1895_s15  ;;  %v784_v22 = vsel %vm766_vm4, %v782_v9, %v783_v10 }
  0x53   : > { %911 = vrot.lane.b32.xlu1 %v2211_v41, %s1893_s10  ;;  %909 = vrot.lane.b32.xlu0 %v2134_v40, %s1893_s10 }
  0x57   : > { %927 = vrot.lane.b32.xlu1 %v725_v36, %s1898_s16  ;;  %925 = vrot.lane.b32.xlu0 %v713_v54, %s1898_s16 }
  0x5b   : > { %833 = vrot.lane.b32.xlu1 %v713_v54, %s1896_s20  ;;  %941 = vrot.lane.b32.xlu0 %v781_v2, %s1899_s21 }
  0x5f   : > { %835 = vrot.lane.b32.xlu1 %v725_v36, %s1896_s20  ;;  %943 = vrot.lane.b32.xlu0 %v784_v22, %s1899_s21 }
  0x63   : > { %851 = vrot.lane.b32.xlu1 %v784_v22, %s1894_s13  ;;  %849 = vrot.lane.b32.xlu0 %v781_v2, %s1894_s13 }
  0x67   : > { %867 = vrot.lane.b32.xlu1 %v2121_v31, %s1892_s17  ;;  %865 = vrot.lane.b32.xlu0 %v2211_v41, %s1892_s17 }
  0x6b   : > { %883 = vrot.lane.b32.xlu1 %v2162_v0, %s1897_s14  ;;  %881 = vrot.lane.b32.xlu0 %v725_v36, %s1897_s14 }
  0x6f   : > { %899 = vrot.lane.b32.xlu1 %v2145_v48, %s1895_s15  ;;  %897 = vrot.lane.b32.xlu0 %v784_v22, %s1895_s15 }
  0x73   : > { %915 = vrot.lane.b32.xlu1 %v2155_v61, %s1893_s10  ;;  %913 = vrot.lane.b32.xlu0 %v2121_v31, %s1893_s10 }
  0x77   : > { %931 = vrot.lane.b32.xlu1 %v2193_v33, %s1898_s16  ;;  %929 = vrot.lane.b32.xlu0 %v2162_v0, %s1898_s16 }
  0x7b   : > { %837 = vrot.lane.b32.xlu1 %v2162_v0, %s1896_s20  ;;  %945 = vrot.lane.b32.xlu0 %v2145_v48, %s1899_s21 }
  0x7f   : > { %839 = vrot.lane.b32.xlu1 %v2193_v33, %s1896_s20  ;;  %947 = vrot.lane.b32.xlu0 %v2176_v12, %s1899_s21 }
  0x83   : > { %855 = vrot.lane.b32.xlu1 %v2176_v12, %s1894_s13  ;;  %853 = vrot.lane.b32.xlu0 %v2145_v48, %s1894_s13  ;;  %s2392_s13 = scalar_lea.vmem %s2539_s4, %s1681_s9 }
  0x87   : > { %871 = vrot.lane.b32.xlu1 %v2180_v15, %s1892_s17  ;;  %869 = vrot.lane.b32.xlu0 %v2155_v61, %s1892_s17 }
  0x8b   : > { %887 = vrot.lane.b32.xlu1 %v2207_v30, %s1897_s14  ;;  %885 = vrot.lane.b32.xlu0 %v2193_v33, %s1897_s14  ;;  %s456_s14 = scalar_lea.vmem %s2541_s6, %s2072_s19 }
  0x8f   : > { %903 = vrot.lane.b32.xlu1 %v2198_v38, %s1895_s15  ;;  %901 = vrot.lane.b32.xlu0 %v2176_v12, %s1895_s15  ;;  %s449_s15 = scalar_lea.vmem %s2540_s5, %s2072_s19 }
  0x91   : > { %v860_v0 = vpop.permute.xlu1 %859  ;;  %v858_v48 = vpop.permute.xlu0 %857 }
  0x93   : > { %919 = vrot.lane.b32.xlu1 %v2215_v44, %s1893_s10  ;;  %917 = vrot.lane.b32.xlu0 %v2180_v15, %s1893_s10 }
  0x95   : > { %v908_v11 = vpop.permute.xlu1 %907  ;;  %v906_v13 = vpop.permute.xlu0 %905 }
  0x97   : > { %935 = vrot.lane.b32.xlu1 %v819_v5, %s1898_s16  ;;  %933 = vrot.lane.b32.xlu0 %v2207_v30, %s1898_s16 }
  0x99   : > { %v844_v14 = vpop.permute.xlu1 %843  ;;  %v890_v18 = vpop.permute.xlu0 %889 }
  0x9b   : > { %951 = vrot.lane.b32.xlu1 %v824_v62, %s1899_s21  ;;  %949 = vrot.lane.b32.xlu0 %v2198_v38, %s1899_s21 }
  0x9d   : > { %v892_v12 = vpop.permute.xlu1 %891  ;;  %v828_v19 = vpop.permute.xlu0 %827 }
  0x9e   : > { %v957_v15 = vsel %vm953_vm8, %v2008_v17, %v828_v19 }
  0x9f   : > { %v974_v25 = vsel %vm970_vm9, %v957_v15, %v844_v14 }
  0xa0   : > { %v991_v32 = vsel %vm987_vm10, %v974_v25, %v860_v0 }
  0xa1   : > { %v874_v20 = vpop.permute.xlu0 %873  ;;  %v842_v21 = vpop.permute.xlu1 %841 }
  0xa5   : > { %v922_v23 = vpop.permute.xlu0 %921  ;;  %v876_v26 = vpop.permute.xlu1 %875 }
  0xa6   : > { %v1008_v33 = vsel %vm1004_vm11, %v991_v32, %v876_v26 }
  0xa7   : > { %v1025_v17 = vsel %vm1021_vm12, %v1008_v33, %v892_v12 }
  0xa8   : > { %v1042_v47 = vsel %vm1038_vm13, %v1025_v17, %v908_v11 }
  0xa9   : > { %v938_v27 = vpop.permute.xlu0 %937  ;;  %v924_v28 = vpop.permute.xlu1 %923 }
  0xaa   : > { %v1059_v30 = vsel %vm1055_vm14, %v1042_v47, %v924_v28 }
  0xad   : > { %v830_v34 = vpop.permute.xlu1 %829  ;;  %v826_v35 = vpop.permute.xlu0 %825 }
  0xae   : > { %v955_v37 = vsel %vm953_vm8, %v2077_v59, %v826_v35  ;;  %v959_v62 = vsel %vm953_vm8, %v2002_v16, %v830_v34 }
  0xaf   : > { %v972_v38 = vsel %vm970_vm9, %v955_v37, %v842_v21 }
  0xb0   : > { %v989_v39 = vsel %vm987_vm10, %v972_v38, %v858_v48 }
  0xb1   : > { %v1006_v42 = vsel %vm1004_vm11, %v989_v39, %v874_v20  ;;  %v832_v43 = vpop.permute.xlu1 %831  ;;  %v940_v46 = vpop.permute.xlu0 %939 }
  0xb2   : > { %v1023_v49 = vsel %vm1021_vm12, %v1006_v42, %v890_v18  ;;  %v1076_v45 = vsel %vm1072_vm15, %v1059_v30, %v940_v46  ;;  %v961_v4 = vsel %vm953_vm8, %v2019_v24, %v832_v43 }
  0xb3   : > { %v1040_v7 = vsel %vm1038_vm13, %v1023_v49, %v906_v13 }
  0xb4   : > { %v1057_v59 = vsel %vm1055_vm14, %v1040_v7, %v922_v23 }
  0xb5   : > { %v848_v50 = vpop.permute.xlu1 %847  ;;  %v846_v51 = vpop.permute.xlu0 %845  ;;  %v1074_v44 = vsel %vm1072_vm15, %v1057_v59, %v938_v27 }
  0xb6   : > { %1769 = vmatprep.mubr.msk.bf16.mxu0 %vm1109_vm0, %v1074_v44  ;;  %v976_v63 = vsel %vm970_vm9, %v959_v62, %v846_v51  ;;  %v978_v8 = vsel %vm970_vm9, %v961_v4, %v848_v50 }
  0xb7   : > { %1770 = vmatmul.mubr.msk.bf16.vlgmr.msra.gmra.mrb[0].mxu0 %vm1109_vm0, %v1076_v45 }
  0xb9   : > { %v864_v52 = vpop.permute.xlu1 %863  ;;  %v862_v53 = vpop.permute.xlu0 %861 }
  0xba   : > { %v993_v1 = vsel %vm987_vm10, %v976_v63, %v862_v53  ;;  %v995_v36 = vsel %vm987_vm10, %v978_v8, %v864_v52 }
  0xbd   : > { %v880_v54 = vpop.permute.xlu1 %879  ;;  %v878_v55 = vpop.permute.xlu0 %877 }
  0xbe   : > { %v1010_v29 = vsel %vm1004_vm11, %v993_v1, %v878_v55  ;;  %v1012_v22 = vsel %vm1004_vm11, %v995_v36, %v880_v54 }
  0xc1   : > { %v896_v56 = vpop.permute.xlu1 %895  ;;  %v894_v57 = vpop.permute.xlu0 %893 }
  0xc2   : > { %v1027_v5 = vsel %vm1021_vm12, %v1010_v29, %v894_v57  ;;  %v1029_v48 = vsel %vm1021_vm12, %v1012_v22, %v896_v56 }
  0xc5   : > { %v912_v58 = vpop.permute.xlu1 %911  ;;  %v910_v60 = vpop.permute.xlu0 %909 }
  0xc6   : > { %v1044_v6 = vsel %vm1038_vm13, %v1027_v5, %v910_v60  ;;  %v1046_v24 = vsel %vm1038_vm13, %v1029_v48, %v912_v58 }
  0xc9   : > { %v928_v2 = vpop.permute.xlu1 %927  ;;  %v926_v3 = vpop.permute.xlu0 %925 }
  0xca   : > { %v1061_v16 = vsel %vm1055_vm14, %v1044_v6, %v926_v3  ;;  %v1063_v11 = vsel %vm1055_vm14, %v1046_v24, %v928_v2 }
  0xcd   : > { %v834_v9 = vpop.permute.xlu1 %833  ;;  %v942_v10 = vpop.permute.xlu0 %941 }
  0xce   : > { %v1078_v0 = vsel %vm1072_vm15, %v1061_v16, %v942_v10  ;;  %v963_v32 = vsel %vm953_vm8, %v2134_v40, %v834_v9 }
  0xcf   : > { %1773 = vmatprep.mubr.msk.bf16.mxu0 %vm1109_vm0, %v1078_v0 }
  0xd1   : > { %v836_v13 = vpop.permute.xlu1 %835  ;;  %v944_v14 = vpop.permute.xlu0 %943 }
  0xd2   : > { %v1080_v18 = vsel %vm1072_vm15, %v1063_v11, %v944_v14  ;;  %v965_v38 = vsel %vm953_vm8, %v2211_v41, %v836_v13 }
  0xd3   : > { %1774 = vmatmul.mubr.msk.bf16.gmra.mrb[4].mxu0 %vm1109_vm0, %v1080_v18 }
  0xd5   : > { %v852_v12 = vpop.permute.xlu1 %851  ;;  %v850_v19 = vpop.permute.xlu0 %849 }
  0xd6   : > { %v980_v33 = vsel %vm970_vm9, %v963_v32, %v850_v19  ;;  %v982_v42 = vsel %vm970_vm9, %v965_v38, %v852_v12 }
  0xd9   : > { %v868_v20 = vpop.permute.xlu1 %867  ;;  %v866_v21 = vpop.permute.xlu0 %865 }
  0xda   : > { %v997_v34 = vsel %vm987_vm10, %v980_v33, %v866_v21  ;;  %v999_v46 = vsel %vm987_vm10, %v982_v42, %v868_v20 }
  0xdd   : > { %v884_v15 = vpop.permute.xlu1 %883  ;;  %v882_v23 = vpop.permute.xlu0 %881 }
  0xde   : > { %v1014_v17 = vsel %vm1004_vm11, %v997_v34, %v882_v23  ;;  %v1016_v7 = vsel %vm1004_vm11, %v999_v46, %v884_v15 }
  0xe1   : > { %v900_v26 = vpop.permute.xlu1 %899  ;;  %v898_v25 = vpop.permute.xlu0 %897 }
  0xe2   : > { %v1031_v39 = vsel %vm1021_vm12, %v1014_v17, %v898_v25  ;;  %v1033_v30 = vsel %vm1021_vm12, %v1016_v7, %v900_v26 }
  0xe5   : > { %v916_v27 = vpop.permute.xlu1 %915  ;;  %v914_v28 = vpop.permute.xlu0 %913 }
  0xe6   : > { %v1048_v43 = vsel %vm1038_vm13, %v1031_v39, %v914_v28  ;;  %v1050_v41 = vsel %vm1038_vm13, %v1033_v30, %v916_v27 }
  0xe9   : > { %v932_v35 = vpop.permute.xlu1 %931  ;;  %v930_v37 = vpop.permute.xlu0 %929 }
  0xea   : > { %v1065_v40 = vsel %vm1055_vm14, %v1048_v43, %v930_v37  ;;  %v1067_v50 = vsel %vm1055_vm14, %v1050_v41, %v932_v35 }
  0xed   : > { %v838_v47 = vpop.permute.xlu1 %837  ;;  %v946_v49 = vpop.permute.xlu0 %945 }
  0xee   : > { %v1082_v59 = vsel %vm1072_vm15, %v1065_v40, %v946_v49  ;;  %v967_v1 = vsel %vm953_vm8, %v2121_v31, %v838_v47 }
  0xef   : > { %1777 = vmatprep.mubr.msk.bf16.mxu1 %vm1109_vm0, %v1082_v59 }
  0xf1   : > { %v840_v51 = vpop.permute.xlu1 %839  ;;  %v948_v44 = vpop.permute.xlu0 %947 }
  0xf2   : > { %v1084_v45 = vsel %vm1072_vm15, %v1067_v50, %v948_v44  ;;  %v969_v2 = vsel %vm953_vm8, %v2155_v61, %v840_v51 }
  0xf3   : > { %1778 = vmatmul.mubr.msk.bf16.vlgmr.msra.gmra.mrb[0].mxu1 %vm1109_vm0, %v1084_v45 }
  0xf5   : > { %v856_v52 = vpop.permute.xlu1 %855  ;;  %v854_v53 = vpop.permute.xlu0 %853 }
  0xf6   : > { %v986_v3 = vsel %vm970_vm9, %v969_v2, %v856_v52  ;;  %v984_v29 = vsel %vm970_vm9, %v967_v1, %v854_v53 }
  0xf9   : > { %v872_v54 = vpop.permute.xlu1 %871  ;;  %v870_v55 = vpop.permute.xlu0 %869 }
  0xfa   : > { %v1003_v4 = vsel %vm987_vm10, %v986_v3, %v872_v54  ;;  %v1001_v5 = vsel %vm987_vm10, %v984_v29, %v870_v55 }
  0xfd   : > { %v888_v56 = vpop.permute.xlu1 %887  ;;  %v886_v57 = vpop.permute.xlu0 %885 }
  0xfe   : > { %v1020_v36 = vsel %vm1004_vm11, %v1003_v4, %v888_v56  ;;  %v1018_v16 = vsel %vm1004_vm11, %v1001_v5, %v886_v57 }
 0x101   : > { %v904_v58 = vpop.permute.xlu1 %903  ;;  %v902_v60 = vpop.permute.xlu0 %901 }
 0x102   : > { %v1037_v31 = vsel %vm1021_vm12, %v1020_v36, %v904_v58  ;;  %v1035_v9 = vsel %vm1021_vm12, %v1018_v16, %v902_v60 }
 0x105   : > { %v920_v62 = vpop.permute.xlu1 %919  ;;  %v918_v63 = vpop.permute.xlu0 %917 }
 0x106   : > { %v1054_v61 = vsel %vm1038_vm13, %v1037_v31, %v920_v62  ;;  %v1052_v10 = vsel %vm1038_vm13, %v1035_v9, %v918_v63 }
 0x109   : > { %v936_v8 = vpop.permute.xlu1 %935  ;;  %v934_v6 = vpop.permute.xlu0 %933 }
 0x10a   : > { %v1071_v22 = vsel %vm1055_vm14, %v1054_v61, %v936_v8  ;;  %v1069_v0 = vsel %vm1055_vm14, %v1052_v10, %v934_v6 }
 0x10d   : > { %v952_v48 = vpop.permute.xlu1 %951  ;;  %v950_v24 = vpop.permute.xlu0 %949 }
 0x10e   : > { %v1088_v11 = vsel %vm1072_vm15, %v1071_v22, %v952_v48  ;;  %v1086_v13 = vsel %vm1072_vm15, %v1069_v0, %v950_v24 }
 0x10f   : > { %1781 = vmatprep.mubr.msk.bf16.mxu1 %vm1109_vm0, %v1086_v13 }
 0x110   : > { %1782 = vmatmul.mubr.msk.bf16.gmra.mrb[4].mxu1 %vm1109_vm0, %v1088_v11 }
 0x18a   : > { %v1771_v14 = vpop.f32.mrb[0].mxu0 }
 0x18b   : > { %v1738_v18 = vpack.c.bf16 %v1771_v14, %v1771_v14  ;;  %v1164_v12 = vpop.f32.mrb[1].mxu0 }
 0x18c   : > { %v1736_v19 = vpack.c.bf16 %v1164_v12, %v1164_v12  ;;  %v1772_v20 = vpop.f32.mrb[2].mxu0 }
 0x18d   : > { %1294 = vst.msk [vmem:[%s2392_s13 + $0x8] sm:$0xf] %vm1291_vm1, %v1738_v18  ;;  %v2396_v21 = vpack.c.bf16 %v1772_v20, %v1771_v14  ;;  %v1739_v15 = vpack.c.bf16 %v1772_v20, %v1772_v20  ;;  %v1167_v23 = vpop.f32.mrb[3].mxu0 }
 0x18e   : > { %1292 = vst.msk [vmem:[%s2392_s13] sm:$0xf] %vm1291_vm1, %v1736_v19  ;;  %v2400_v26 = vpack.c.bf16 %v1167_v23, %v1164_v12  ;;  %v1737_v25 = vpack.c.bf16 %v1167_v23, %v1167_v23 }
 0x18f   : > { %1295 = vst.msk [vmem:[%s2392_s13 + $0xc] sm:$0xf] %vm1291_vm1, %v1739_v15  ;;  %v1310_v27 = vunpack.c.l.bf16 %v2396_v21  ;;  %v1311_v33 = vunpack.c.h.bf16 %v2396_v21 }
 0x190   : > { %1293 = vst.msk [vmem:[%s2392_s13 + $0x4] sm:$0xf] %vm1291_vm1, %v1737_v25  ;;  %v1308_v28 = vunpack.c.l.bf16 %v2400_v26  ;;  %v1309_v32 = vunpack.c.h.bf16 %v2400_v26 }
 0x191   : > { %v1327_v17 = vsel %vm953_vm8, %v1310_v27, 0.0  ;;  %v1329_v39 = vsel %vm953_vm8, %v1311_v33, 0.0 }
 0x192   : > { %v1324_v34 = vsel %vm953_vm8, %v1308_v28, 0.0  ;;  %v1325_v35 = vsel %vm953_vm8, %v1309_v32, 0.0 }
 0x193   : > { %v1326_v37 = vadd.f32 %v1325_v35, %v1324_v34 }
 0x195   : > { %v1328_v38 = vadd.f32 %v1327_v17, %v1326_v37 }
 0x197   : > { %v1330_v42 = vadd.f32 %v1329_v39, %v1328_v38 }
 0x1a6   : > { %v1775_v43 = vpop.f32.mrb[4].mxu0 }
 0x1a7   : > { %v1742_v46 = vpack.c.bf16 %v1775_v43, %v1775_v43  ;;  %v1180_v40 = vpop.f32.mrb[5].mxu0 }
 0x1a8   : > { %v1740_v47 = vpack.c.bf16 %v1180_v40, %v1180_v40  ;;  %v1776_v49 = vpop.f32.mrb[6].mxu0 }
 0x1a9   : > { %1298 = vst.msk [vmem:[%s2392_s13 + $0x18] sm:$0xf] %vm1291_vm1, %v1742_v46  ;;  %v2424_v7 = vpack.c.bf16 %v1776_v49, %v1775_v43  ;;  %v1743_v59 = vpack.c.bf16 %v1776_v49, %v1776_v49  ;;  %v1183_v30 = vpop.f32.mrb[7].mxu0 }
 0x1aa   : > { %1296 = vst.msk [vmem:[%s2392_s13 + $0x10] sm:$0xf] %vm1291_vm1, %v1740_v47  ;;  %v2428_v41 = vpack.c.bf16 %v1183_v30, %v1180_v40  ;;  %v1741_v50 = vpack.c.bf16 %v1183_v30, %v1183_v30 }
 0x1ab   : > { %1299 = vst.msk [vmem:[%s2392_s13 + $0x1c] sm:$0xf] %vm1291_vm1, %v1743_v59  ;;  %v1314_v45 = vunpack.c.l.bf16 %v2424_v7  ;;  %v1315_v54 = vunpack.c.h.bf16 %v2424_v7 }
 0x1ac   : > { %1297 = vst.msk [vmem:[%s2392_s13 + $0x14] sm:$0xf] %vm1291_vm1, %v1741_v50  ;;  %v1312_v51 = vunpack.c.l.bf16 %v2428_v41  ;;  %v1313_v44 = vunpack.c.h.bf16 %v2428_v41 }
 0x1ad   : > { %v1335_v57 = vsel %vm953_vm8, %v1314_v45, 0.0  ;;  %v1337_v60 = vsel %vm953_vm8, %v1315_v54, 0.0 }
 0x1ae   : > { %v1331_v52 = vsel %vm953_vm8, %v1312_v51, 0.0  ;;  %v1333_v55 = vsel %vm953_vm8, %v1313_v44, 0.0 }
 0x1af   : > { %v1332_v53 = vadd.f32 %v1331_v52, %v1330_v42 }
 0x1b1   : > { %v1334_v56 = vadd.f32 %v1333_v55, %v1332_v53 }
 0x1b3   : > { %v1336_v58 = vadd.f32 %v1335_v57, %v1334_v56 }
 0x1b5   : > { %v1338_v62 = vadd.f32 %v1337_v60, %v1336_v58 }
 0x1c6   : > { %v1779_v63 = vpop.f32.mrb[0].mxu1 }
 0x1c7   : > { %v1746_v1 = vpack.c.bf16 %v1779_v63, %v1779_v63  ;;  %v1196_v2 = vpop.f32.mrb[1].mxu1 }
 0x1c8   : > { %v1744_v3 = vpack.c.bf16 %v1196_v2, %v1196_v2  ;;  %v1780_v29 = vpop.f32.mrb[2].mxu1 }
 0x1c9   : > { %1302 = vst.msk [vmem:[%s2392_s13 + $0x28] sm:$0xf] %vm1291_vm1, %v1746_v1  ;;  %v2452_v4 = vpack.c.bf16 %v1780_v29, %v1779_v63  ;;  %v1747_v5 = vpack.c.bf16 %v1780_v29, %v1780_v29  ;;  %v1199_v8 = vpop.f32.mrb[3].mxu1 }
 0x1ca   : > { %1300 = vst.msk [vmem:[%s2392_s13 + $0x20] sm:$0xf] %vm1291_vm1, %v1744_v3  ;;  %v1231_v6 = vpack.c.bf16 %v1199_v8, %v1196_v2  ;;  %v1745_v36 = vpack.c.bf16 %v1199_v8, %v1199_v8 }
 0x1cb   : > { %1303 = vst.msk [vmem:[%s2392_s13 + $0x2c] sm:$0xf] %vm1291_vm1, %v1747_v5  ;;  %v1318_v9 = vunpack.c.l.bf16 %v2452_v4  ;;  %v1319_v22 = vunpack.c.h.bf16 %v2452_v4 }
 0x1cc   : > { %1301 = vst.msk [vmem:[%s2392_s13 + $0x24] sm:$0xf] %vm1291_vm1, %v1745_v36  ;;  %v1316_v16 = vunpack.c.l.bf16 %v1231_v6  ;;  %v1317_v31 = vunpack.c.h.bf16 %v1231_v6 }
 0x1cd   : > { %v1343_v24 = vsel %vm953_vm8, %v1318_v9, 0.0  ;;  %v1345_v13 = vsel %vm953_vm8, %v1319_v22, 0.0 }
 0x1ce   : > { %v1339_v61 = vsel %vm953_vm8, %v1316_v16, 0.0  ;;  %v1341_v0 = vsel %vm953_vm8, %v1317_v31, 0.0 }
 0x1cf   : > { %v1340_v10 = vadd.f32 %v1339_v61, %v1338_v62 }
 0x1d1   : > { %v1342_v48 = vadd.f32 %v1341_v0, %v1340_v10 }
 0x1d3   : > { %v1344_v11 = vadd.f32 %v1343_v24, %v1342_v48 }
 0x1d5   : > { %v1346_v14 = vadd.f32 %v1345_v13, %v1344_v11 }
 0x1e3   : > { %v1783_v18 = vpop.f32.mrb[4].mxu1 }
 0x1e4   : > { %v1750_v12 = vpack.c.bf16 %v1783_v18, %v1783_v18  ;;  %v1212_v19 = vpop.f32.mrb[5].mxu1 }
 0x1e5   : > { %v1748_v20 = vpack.c.bf16 %v1212_v19, %v1212_v19  ;;  %v1784_v15 = vpop.f32.mrb[6].mxu1 }
 0x1e6   : > { %1306 = vst.msk [vmem:[%s2392_s13 + $0x38] sm:$0xf] %vm1291_vm1, %v1750_v12  ;;  %v1234_v23 = vpack.c.bf16 %v1784_v15, %v1783_v18  ;;  %v1751_v25 = vpack.c.bf16 %v1784_v15, %v1784_v15  ;;  %v1215_v34 = vpop.f32.mrb[7].mxu1 }
 0x1e7   : > { %1304 = vst.msk [vmem:[%s2392_s13 + $0x30] sm:$0xf] %vm1291_vm1, %v1748_v20  ;;  %v1233_v35 = vpack.c.bf16 %v1215_v34, %v1212_v19  ;;  %v1749_v37 = vpack.c.bf16 %v1215_v34, %v1215_v34 }
 0x1e8   : > { %1307 = vst.msk [vmem:[%s2392_s13 + $0x3c] sm:$0xf] %vm1291_vm1, %v1751_v25  ;;  %v1322_v39 = vunpack.c.l.bf16 %v1234_v23  ;;  %v1323_v46 = vunpack.c.h.bf16 %v1234_v23 }
 0x1e9   : > { %1305 = vst.msk [vmem:[%s2392_s13 + $0x34] sm:$0xf] %vm1291_vm1, %v1749_v37  ;;  %v1320_v17 = vunpack.c.l.bf16 %v1233_v35  ;;  %v1321_v38 = vunpack.c.h.bf16 %v1233_v35 }
 0x1ea   : > { %v1351_v49 = vsel %vm953_vm8, %v1322_v39, 0.0  ;;  %v1353_v30 = vsel %vm953_vm8, %v1323_v46, 0.0 }
 0x1eb   : > { %v1347_v42 = vsel %vm953_vm8, %v1320_v17, 0.0  ;;  %v1349_v40 = vsel %vm953_vm8, %v1321_v38, 0.0 }
 0x1ec   : > { %v1348_v43 = vadd.f32 %v1347_v42, %v1346_v14 }
 0x1ee   : > { %v1350_v47 = vadd.f32 %v1349_v40, %v1348_v43 }
 0x1f0   : > { %v1352_v59 = vadd.f32 %v1351_v49, %v1350_v47 }
 0x1f2   : > { %v1354_v50 = vadd.f32 %v1353_v30, %v1352_v59 }
 0x1f4   : > { %v1355_v52 = vrot.slane %v1354_v50, 4 }
 0x1f6   : > { %v1356_v53 = vadd.f32 %v1355_v52, %v1354_v50 }
 0x1f8   : > { %v1357_v55 = vrot.slane %v1356_v53, 2 }
 0x1fa   : > { %v1358_v56 = vadd.f32 %v1357_v55, %v1356_v53 }
 0x1fc   : > { %v1359_v57 = vrot.slane %v1358_v56, 1 }
 0x1fe   : > { %v1360_v58 = vadd.f32 %v1359_v57, %v1358_v56 }
 0x200   : > { %v1361_v60 = vmul.f32 0.0078125, %v1360_v58  ;;  %1432 = vst.msk [vmem:[%s449_s15] sm:$0x1] %vm1431_vm2, %v1360_v58 }
 0x202   : > { %v1362_v62 = vsub.f32 %v1308_v28, %v1361_v60  ;;  %v1363_v63 = vsub.f32 %v1309_v32, %v1361_v60  ;;  %v1364_v1 = vsub.f32 %v1310_v27, %v1361_v60  ;;  %v1365_v2 = vsub.f32 %v1311_v33, %v1361_v60 }
 0x203   : > { %v1366_v3 = vsub.f32 %v1312_v51, %v1361_v60  ;;  %v1367_v29 = vsub.f32 %v1313_v44, %v1361_v60  ;;  %v1368_v4 = vsub.f32 %v1314_v45, %v1361_v60  ;;  %v1369_v28 = vsub.f32 %v1315_v54, %v1361_v60 }
 0x204   : > { %v1370_v26 = vsub.f32 %v1316_v16, %v1361_v60  ;;  %v1371_v32 = vsub.f32 %v1317_v31, %v1361_v60  ;;  %v1372_v5 = vsub.f32 %v1318_v9, %v1361_v60  ;;  %v1373_v8 = vsub.f32 %v1319_v22, %v1361_v60 }
 0x205   : > { %v1374_v27 = vsub.f32 %v1320_v17, %v1361_v60  ;;  %v1375_v6 = vsub.f32 %v1321_v38, %v1361_v60  ;;  %v1376_v21 = vsub.f32 %v1322_v39, %v1361_v60  ;;  %v1377_v33 = vsub.f32 %v1323_v46, %v1361_v60 }
 0x206   : > { %v1378_v36 = vmul.f32 %v1362_v62, %v1362_v62  ;;  %v1379_v61 = vmul.f32 %v1363_v63, %v1363_v63  ;;  %v1380_v51 = vmul.f32 %v1364_v1, %v1364_v1  ;;  %v1381_v10 = vmul.f32 %v1365_v2, %v1365_v2 }
 0x207   : > { %v1382_v0 = vmul.f32 %v1366_v3, %v1366_v3  ;;  %v1383_v16 = vmul.f32 %v1367_v29, %v1367_v29  ;;  %v1384_v22 = vmul.f32 %v1368_v4, %v1368_v4  ;;  %v1385_v11 = vmul.f32 %v1369_v28, %v1369_v28 }
 0x208   : > { %v1394_v41 = vsel %vm953_vm8, %v1378_v36, 0.0  ;;  %v1395_v44 = vsel %vm953_vm8, %v1379_v61, 0.0  ;;  %v1397_v7 = vsel %vm953_vm8, %v1380_v51, 0.0  ;;  %v1399_v31 = vsel %vm953_vm8, %v1381_v10, 0.0 }
 0x209   : > { %v1396_v45 = vadd.f32 %v1395_v44, %v1394_v41  ;;  %v1401_v48 = vsel %vm953_vm8, %v1382_v0, 0.0  ;;  %v1403_v13 = vsel %vm953_vm8, %v1383_v16, 0.0  ;;  %v1386_v18 = vmul.f32 %v1370_v26, %v1370_v26 }
 0x20a   : > { %v1405_v12 = vsel %vm953_vm8, %v1384_v22, 0.0  ;;  %v1387_v20 = vmul.f32 %v1371_v32, %v1371_v32  ;;  %v1407_v15 = vsel %vm953_vm8, %v1385_v11, 0.0  ;;  %v1388_v25 = vmul.f32 %v1372_v5, %v1372_v5 }
 0x20b   : > { %v1398_v54 = vadd.f32 %v1397_v7, %v1396_v45  ;;  %v1409_v34 = vsel %vm953_vm8, %v1386_v18, 0.0  ;;  %v1389_v37 = vmul.f32 %v1373_v8, %v1373_v8  ;;  %v1390_v39 = vmul.f32 %v1374_v27, %v1374_v27 }
 0x20c   : > { %v1411_v17 = vsel %vm953_vm8, %v1387_v20, 0.0  ;;  %v1413_v42 = vsel %vm953_vm8, %v1388_v25, 0.0  ;;  %v1391_v46 = vmul.f32 %v1375_v6, %v1375_v6  ;;  %v1392_v49 = vmul.f32 %v1376_v21, %v1376_v21 }
 0x20d   : > { %v1400_v9 = vadd.f32 %v1399_v31, %v1398_v54  ;;  %v1415_v40 = vsel %vm953_vm8, %v1389_v37, 0.0  ;;  %v1417_v59 = vsel %vm953_vm8, %v1390_v39, 0.0  ;;  %v1393_v50 = vmul.f32 %v1377_v33, %v1377_v33 }
 0x20e   : > { %v1419_v52 = vsel %vm953_vm8, %v1391_v46, 0.0  ;;  %v1421_v55 = vsel %vm953_vm8, %v1392_v49, 0.0 }
 0x20f   : > { %v1402_v24 = vadd.f32 %v1401_v48, %v1400_v9  ;;  %v1423_v57 = vsel %vm953_vm8, %v1393_v50, 0.0 }
 0x211   : > { %v1404_v14 = vadd.f32 %v1403_v13, %v1402_v24 }
 0x213   : > { %v1406_v19 = vadd.f32 %v1405_v12, %v1404_v14 }
 0x215   : > { %v1408_v23 = vadd.f32 %v1407_v15, %v1406_v19 }
 0x217   : > { %v1410_v35 = vadd.f32 %v1409_v34, %v1408_v23 }
 0x219   : > { %v1412_v38 = vadd.f32 %v1411_v17, %v1410_v35 }
 0x21b   : > { %v1414_v43 = vadd.f32 %v1413_v42, %v1412_v38 }
 0x21d   : > { %v1416_v47 = vadd.f32 %v1415_v40, %v1414_v43 }
 0x21f   : > { %v1418_v30 = vadd.f32 %v1417_v59, %v1416_v47 }
 0x221   : > { %v1420_v53 = vadd.f32 %v1419_v52, %v1418_v30 }
 0x223   : > { %v1422_v56 = vadd.f32 %v1421_v55, %v1420_v53 }
 0x225   : > { %v1424_v58 = vadd.f32 %v1423_v57, %v1422_v56 }
 0x227   : > { %v1425_v60 = vrot.slane %v1424_v58, 4 }
 0x229   : > { %v1426_v62 = vadd.f32 %v1425_v60, %v1424_v58 }
 0x22b   : > { %v1427_v63 = vrot.slane %v1426_v62, 2 }
 0x22d   : > { %v1428_v1 = vadd.f32 %v1427_v63, %v1426_v62 }
 0x22f   : > { %v1429_v2 = vrot.slane %v1428_v1, 1 }
 0x231   : > { %v1430_v3 = vadd.f32 %v1429_v2, %v1428_v1 }
 0x233   : > { %1433 = vst.msk [vmem:[%s456_s14] sm:$0x1] %vm1431_vm2, %v1430_v3 }
 0x234 PF: > { %s17_s25 = sadd.s32 1, %s1890_s25   ;;  %s2547_s21 = smov %s1882_s23 }
 0x235   : > { %p14_p12 = scmp.ge.s32.totalorder %s17_s25, 6   ;;  %s2548_s22 = smov %s1886_s24 }
 0x236   : > { %s2549_s23 = smov %s2552_s26  ;;  %s2550_s24 = smov %s2556_s27 }
 0x237   :  { %16 = sbr.rel (!%p14_p12) target bundleno = 3 (0x3), region = 96 }

// kernel: block_forward.4
= control target key start
LH: loop header
LB: loop body
LE: loop exit
PB: predicated region body
PF: predicated region fallthrough
CT: control target
= control target key end

     0   :  { %s2083_s30 = smov 0   ;;  %s2085_s10 = smov 0   ;;  %s2766_s0 = inlined_call_operand.vmem [shape: bf16[2,16,16,4], index: 0, kind: input, shape index: {}, may-alias: {0,1,2}]   ;;  %s2767_s1 = inlined_call_operand.vmem [shape: bf16[2,16,16,4], index: 1, kind: input, shape index: {}, may-alias: {0,1,2}]   ;;  %s2768_s2 = inlined_call_operand.vmem [shape: bf16[2,16,16,4], index: 2, kind: input, shape index: {}, may-alias: {0,1,2}]   ;;  %s2769_s3 = inlined_call_operand.vmem [shape: f32[2,16,16,4], index: 3, kind: input, shape index: {}]   ;;  %s2770_s4 = inlined_call_operand.vmem [shape: bf16[36,4], index: 4, kind: input, shape index: {}]   ;;  %s2771_s5 = inlined_call_operand.vmem [shape: f32[1,4], index: 5, kind: input, shape index: {}]   ;;  %s2772_s6 = inlined_call_operand.vmem [shape: f32[1,4], index: 6, kind: input, shape index: {}]   ;;  %s2773_s7 = inlined_call_operand.vmem [shape: f32[2,16,16,4], index: 7, kind: output, shape index: {0}]   ;;  %s2774_s8 = inlined_call_operand.vmem [shape: f32[2,2,1,4], index: 8, kind: output, shape index: {1}]   ;;  %s2775_s9 = inlined_call_operand.vmem [shape: f32[2,2,1,4], index: 9, kind: output, shape index: {2}]  }
   0x1   :  { %s2087_s11 = smov 0   ;;  %s2089_s12 = smov 0  }
   0x2   :  { %s2091_s13 = smov 0  }
   0x3 LB: > { %s29_s14 = sadd.s32 1, %s2015_s11  ;;  %s32_s15 = sadd.s32 1, %s2019_s12  ;;  %s2023_s13 = sphi %s2091_s13, %s20_s13   ;;  %s2019_s12 = sphi %s2089_s12, %s2786_s12   ;;  %s2015_s11 = sphi %s2087_s11, %s2785_s11   ;;  %s2011_s10 = sphi %s2085_s10, %s2784_s10   ;;  %s2007_s30 = sphi %s2083_s30, %s2783_s30  }
   0x4   : > { %p30_p0 = scmp.ge.s32.totalorder %s29_s14, 2  ;;  %p1797_p1 = scmp.ge.s32.totalorder %s2023_s13, 1 }
   0x5   : > { %p400_p2 = scmp.lt.s32.totalorder %s2023_s13, 5 }
   0x6   : > { %s2788_s14 = smov (%p30_p0, %s29_s14), 0  ;;  %s2790_s15 = smov (!%p30_p0, %s32_s15), %s2019_s12 }
   0x7   : > { %p401_p3 = pnand %p1797_p1, %p400_p2  ;;  %p34_p4 = scmp.ge.s32.totalorder %s2790_s15, 2 }
   0x8   : > { %s2116_s16 = sshll.u32 (!%p401_p3), %s2007_s30, 3  ;;  %p500_p5 = scmp.lt.s32.totalorder (!%p401_p3), %s2011_s10, 1  ;;  %v2137_v0 = vld [vmem:[%s2771_s5] ss:$0 sm:$0xff] (!%p401_p3)  ;;  %vm804_vm0 = vcmask (!%p401_p3), 1040384   ;;  %vm940_vm3 = vcmask (!%p401_p3), 1046528  }
   0x9   : > { %s2792_s15 = smov (%p34_p4, %s2790_s15), 0  ;;  %404 = sbr.rel (%p401_p3) target bundleno = 569 (0x239), region = 48 }
   0xa   : > { %p516_p6 = scmp.lt.s32.totalorder (!%p401_p3), %s2116_s16, 15  ;;  %s1799_s27 = sadd.s32 (!%p401_p3), 4294967295, %s2116_s16  ;;  %v2148_v9 = vld [vmem:[%s2772_s6] ss:$0 sm:$0xff] (!%p401_p3)  ;;  %vm805_vm1 = vsmask.f32 (!%p401_p3), 256 }
   0xb   : > { %p692_p7 = scmp.gt.s32.totalorder (!%p401_p3), %s2007_s30, 0  ;;  %p498_p8 = scmp.gt.s32.totalorder (!%p401_p3), %s1799_s27, 0  ;;  %vm2189_vm2 = vmand (!%p401_p3), %vm804_vm0, %vm805_vm1  ;;  %vm827_vm5 = vsmask.f32 (!%p401_p3), 7424  ;;  %vm1316_vm7 = vcmask (!%p401_p3), 1041408   ;;  %vm1127_vm8 = vcmask (!%p401_p3), 31744  }
   0xc   : > { %p1800_p9 = scmp.lt.s32.totalorder (!%p401_p3), %s1799_s27, 15  ;;  %p565_p11 = scmp.lt.s32.totalorder (!%p401_p3), %s2007_s30, 1  ;;  %vm1144_vm9 = vcmask (!%p401_p3), 64512   ;;  %vm1161_vm10 = vcmask (!%p401_p3), 97280   ;;  %vm1178_vm11 = vcmask (!%p401_p3), 130048   ;;  %vm1195_vm12 = vcmask (!%p401_p3), 162816  }
   0xd   : > { %s2025_s23 = smov (!%p401_p3), 12   ;;  %s2029_s26 = smov (!%p401_p3), 32   ;;  %vm1212_vm13 = vcmask (!%p401_p3), 195584   ;;  %vm1229_vm14 = vcmask (!%p401_p3), 228352   ;;  %vm1246_vm15 = vcmask (!%p401_p3), 261120   ;;  %vm1299_vm0 = vcmask (!%p401_p3), 293888  }
   0xe   : > { %vm1540_vm1 = vcmask (!%p401_p3), 24576  }
  0x10   : > { %s2794_s10 = smov (!%p500_p5, %s2011_s10), 1 }
  0x11   : > { %s517_s17 = scalar_select %p516_p6, %s2116_s16, 15 }
  0x12   : > { %s2123_s18 = sshll.u32 %s2794_s10, 5  ;;  %s1827_s29 = sshll.u32 %s2794_s10, 1 }
  0x13   : > { %s1809_s19 = sshll.u32 %s517_s17, 1 }
  0x14   : > { %s2126_s20 = sadd.s32 %s1809_s19, %s2123_s18 }
  0x15   : > { %s1811_s21 = sshll.u32 %s2126_s20, 2 }
  0x16   : > { %s2132_s24 = scalar_lea.vmem %s2767_s1, %s1811_s21  ;;  %s525_s21 = sadd.s32 8, %s2116_s16 }
  0x17   : > { %v1886_v1 = vld [vmem:[%s2132_s24 + $0x8] sm:$0xff]   ;;  %v1851_v2 = vld [vmem:[%s2132_s24] sm:$0xff]   ;;  %v1887_v3 = vld [vmem:[%s2132_s24 + $0x10] sm:$0xff]   ;;  %s499_s17 = scalar_select %p498_p8, %s1799_s27, 0 }
  0x18   : > { %v1856_v4 = vunpack.c.l.bf16 %v1886_v1  ;;  %v1857_v5 = vunpack.c.h.bf16 %v1886_v1  ;;  %v1852_v6 = vunpack.c.l.bf16 %v1851_v2  ;;  %v1853_v7 = vunpack.c.h.bf16 %v1851_v2  ;;  %v1888_v8 = vld [vmem:[%s2132_s24 + $0x18] sm:$0xff]   ;;  %s2162_s19 = scalar_select %p692_p7, 1, 0  ;;  %v1889_v62 = vld [vmem:[%s2132_s24 + $0x20] sm:$0xff]   ;;  %v1891_v1 = vld [vmem:[%s2132_s24 + $0x30] sm:$0xff]  }
  0x19   : > { %v1860_v10 = vunpack.c.l.bf16 %v1887_v3  ;;  %v1861_v11 = vunpack.c.h.bf16 %v1887_v3  ;;  %v1864_v18 = vunpack.c.l.bf16 %v1888_v8  ;;  %v1865_v19 = vunpack.c.h.bf16 %v1888_v8  ;;  %s2796_s17 = smov (!%p1800_p9, %s499_s17), 15  ;;  %p2170_p10 = scmp.lt.s32.totalorder %s525_s21, 15 }
  0x1a   : > { %v629_v12 = vmul.f32 %v1856_v4, %v2137_v0  ;;  %v630_v13 = vmul.f32 %v1857_v5, %v2137_v0  ;;  %v627_v14 = vmul.f32 %v1852_v6, %v2137_v0  ;;  %v628_v15 = vmul.f32 %v1853_v7, %v2137_v0  ;;  %s1805_s22 = sshll.u32 %s2796_s17, 1 }
  0x1b   : > { %v631_v16 = vmul.f32 %v1860_v10, %v2137_v0  ;;  %v632_v17 = vmul.f32 %v1861_v11, %v2137_v0  ;;  %v633_v32 = vmul.f32 %v1864_v18, %v2137_v0  ;;  %v634_v33 = vmul.f32 %v1865_v19, %v2137_v0  ;;  %s506_s25 = sadd.s32 %s2123_s18, %s1805_s22  ;;  %s2798_s21 = smov (!%p2170_p10, %s525_s21), 15 }
  0x1c   : > { %v656_v20 = vadd.f32 %v2148_v9, %v629_v12  ;;  %v657_v21 = vadd.f32 %v2148_v9, %v630_v13  ;;  %v654_v22 = vadd.f32 %v2148_v9, %v627_v14  ;;  %v655_v23 = vadd.f32 %v2148_v9, %v628_v15  ;;  %s1807_s16 = sshll.u32 %s506_s25, 2  ;;  %s2800_s21 = smov (!%p2170_p10, %s2798_s21), 15 }
  0x1d   : > { %v658_v24 = vadd.f32 %v2148_v9, %v631_v16  ;;  %v659_v25 = vadd.f32 %v2148_v9, %v632_v17  ;;  %s508_s28 = scalar_lea.vmem %s2766_s0, %s1807_s16  ;;  %v660_v44 = vadd.f32 %v2148_v9, %v633_v32  ;;  %v661_v45 = vadd.f32 %v2148_v9, %v634_v33  ;;  %s2202_s22 = sshll.u32 %s2800_s21, 1 }
  0x1e   : > { %v676_v26 = vmax.f32 %v656_v20, 0.0  ;;  %v677_v27 = vmax.f32 %v657_v21, 0.0  ;;  %v674_v28 = vmax.f32 %v654_v22, 0.0  ;;  %v675_v29 = vmax.f32 %v655_v23, 0.0  ;;  %v1847_v43 = vld [vmem:[%s508_s28] sm:$0xff]   ;;  %s566_s17 = scalar_select %p565_p11, %s2007_s30, 1 }
  0x1f   : > { %v678_v30 = vmax.f32 %v658_v24, 0.0  ;;  %v679_v31 = vmax.f32 %v659_v25, 0.0  ;;  %v1848_v48 = vunpack.c.l.bf16 %v1847_v43  ;;  %v1849_v51 = vunpack.c.h.bf16 %v1847_v43  ;;  %s2026_s21 = smov 24   ;;  %s2027_s25 = smov 20  }
  0x20   : > { %v706_v34 = vpack.c.bf16 %v677_v27, %v676_v26  ;;  %v705_v35 = vpack.c.bf16 %v675_v29, %v674_v28  ;;  %v694_v54 = vstv %s2162_s19  ;;  %s2196_s10 = sadd.s32 %s1827_s29, %s566_s17  ;;  %v680_v57 = vmax.f32 %v660_v44, 0.0  ;;  %s534_s19 = sadd.s32 %s2202_s22, %s2123_s18 }
  0x21   : > { %v707_v36 = vpack.c.bf16 %v679_v31, %v678_v30  ;;  %v681_v58 = vmax.f32 %v661_v45, 0.0  ;;  %v625_v61 = vmul.f32 %v1848_v48, %v2137_v0  ;;  %v626_v63 = vmul.f32 %v1849_v51, %v2137_v0  ;;  %s2028_s16 = smov 8   ;;  %s2285_s27 = sshll.u32 %s534_s19, 2 }
  0x22   : > { %v729_v37 = vshrl.u32 %v706_v34, 16  ;;  %v732_v38 = vshll.u32 %v706_v34, 16  ;;  %v722_v39 = vshrl.u32 %v705_v35, 16  ;;  %v725_v40 = vshll.u32 %v705_v35, 16  ;;  %s536_s29 = scalar_lea.vmem %s2768_s2, %s2285_s27  ;;  %s2030_s17 = smov 4  }
  0x23   : > { %v736_v41 = vshrl.u32 %v707_v36, 16  ;;  %v739_v42 = vshll.u32 %v707_v36, 16  ;;  %vm2221_vm4 = vcmp.eq.s32.totalorder %v694_v54, 1  ;;  %v652_v5 = vadd.f32 %v2148_v9, %v625_v61  ;;  %v1890_v36 = vld [vmem:[%s2132_s24 + $0x28] sm:$0xff]   ;;  %s2031_s27 = smov 16   ;;  %s2032_s28 = smov 28  }
  0x24   : > { %v731_v46 = vrot.slane %v729_v37, 7  ;;  %v724_v47 = vrot.slane %v722_v39, 7  ;;  %v653_v7 = vadd.f32 %v2148_v9, %v626_v63  ;;  %v708_v8 = vpack.c.bf16 %v681_v58, %v680_v57 }
  0x25   : > { %v738_v50 = vrot.slane %v736_v41, 7  ;;  %v1868_v10 = vunpack.c.l.bf16 %v1889_v62  ;;  %v672_v11 = vmax.f32 %v652_v5, 0.0  ;;  %v1869_v15 = vunpack.c.h.bf16 %v1889_v62 }
  0x26   : > { %v734_v52 = vor.u32 %v732_v38, %v731_v46  ;;  %v727_v53 = vor.u32 %v725_v40, %v724_v47  ;;  %v2200_v56 = vsel %vm2189_vm2, %v724_v47, 0  ;;  %v819_v6 = vsel %vm2189_vm2, %v731_v46, 0 }
  0x27   : > { %v741_v55 = vor.u32 %v739_v42, %v738_v50  ;;  %v945_v4 = vrot.slane %v2200_v56, 1  ;;  %v820_v12 = vsel %vm2189_vm2, %v738_v50, 0  ;;  %v673_v13 = vmax.f32 %v653_v7, 0.0 }
  0x28   : > { %v2206_v59 = vsel %vm2189_vm2, 0, %v734_v52  ;;  %v2210_v60 = vsel %vm2189_vm2, 0, %v727_v53  ;;  %v948_v18 = vrot.slane %v819_v6, 1  ;;  %v696_v19 = vsel %vm2221_vm4, %v672_v11, 0.0 }
  0x29   : > { %1033 = vrot.lane.b32.xlu1 %v2206_v59, %s2025_s23  ;;  %1031 = vrot.lane.b32.xlu0 %v2210_v60, %s2025_s23  ;;  %v2227_v2 = vsel %vm2189_vm2, 0, %v741_v55  ;;  %v944_v3 = vrot.slane %v2210_v60, 1  ;;  %v843_v14 = vshll.u32 %v2210_v60, 16  ;;  %v947_v17 = vrot.slane %v2206_v59, 1 }
  0x2a   : > { %v697_v20 = vsel %vm2221_vm4, %v673_v13, 0.0  ;;  %v855_v21 = vshll.u32 %v2206_v59, 16  ;;  %v743_v22 = vshrl.u32 %v708_v8, 16  ;;  %v635_v23 = vmul.f32 %v1868_v10, %v2137_v0 }
  0x2b   : > { %v946_v16 = vsel %vm940_vm3, %v944_v3, %v945_v4  ;;  %v951_v24 = vrot.slane %v820_v12, 1  ;;  %v704_v25 = vpack.c.bf16 %v697_v20, %v696_v19  ;;  %v867_v26 = vshll.u32 %v2227_v2, 16 }
  0x2c   : > { %v746_v27 = vshll.u32 %v708_v8, 16  ;;  %v950_v28 = vrot.slane %v2227_v2, 1  ;;  %v841_v29 = vshrl.u32 %v2210_v60, 16  ;;  %v845_v30 = vrot.slane %v843_v14, 1 }
  0x2d   : > { %1081 = vrot.lane.b32.xlu1 %v2227_v2, %s2026_s21  ;;  %1079 = vrot.lane.b32.xlu0 %v2206_v59, %s2026_s21  ;;  %v848_v31 = vshll.u32 %v2200_v56, 16  ;;  %v2257_v32 = vsel %vm940_vm3, %v947_v17, %v948_v18  ;;  %v715_v33 = vshrl.u32 %v704_v25, 16  ;;  %v718_v34 = vshll.u32 %v704_v25, 16 }
  0x2e   : > { %v636_v35 = vmul.f32 %v1869_v15, %v2137_v0  ;;  %v853_v37 = vshrl.u32 %v2206_v59, 16  ;;  %v857_v38 = vrot.slane %v855_v21, 1  ;;  %v860_v39 = vshll.u32 %v819_v6, 16 }
  0x2f   : > { %v872_v40 = vshll.u32 %v820_v12, 16  ;;  %v717_v41 = vrot.slane %v715_v33, 7  ;;  %v865_v42 = vshrl.u32 %v2227_v2, 16  ;;  %v869_v43 = vrot.slane %v867_v26, 1  ;;  %v1892_v26 = vld [vmem:[%s2132_s24 + $0x38] sm:$0xff]   ;;  %s569_s24 = scalar_lea.vmem %s2774_s8, %s2196_s10 }
  0x30   : > { %v745_v44 = vrot.slane %v743_v22, 7  ;;  %v2268_v45 = vsel %vm940_vm3, %v950_v28, %v951_v24  ;;  %v846_v46 = vor.u32 %v845_v30, %v841_v29  ;;  %v850_v47 = vrot.slane %v848_v31, 1  ;;  %v1982_v28 = vld [vmem:[%s2770_s4] sm:$0xff]  }
  0x31   : > { %1063 = vrot.lane.b32.xlu0 %v946_v16, %s2027_s25  ;;  %1017 = vrot.lane.b32.xlu1 %v946_v16, %s2028_s16  ;;  %v1872_v48 = vunpack.c.l.bf16 %v1890_v36  ;;  %v720_v50 = vor.u32 %v718_v34, %v717_v41  ;;  %v2272_v51 = vsel %vm2189_vm2, %v717_v41, 0  ;;  %v662_v52 = vadd.f32 %v2148_v9, %v635_v23 }
  0x32   : > { %v663_v53 = vadd.f32 %v2148_v9, %v636_v35  ;;  %v942_v54 = vrot.slane %v2272_v51, 1  ;;  %v858_v55 = vor.u32 %v857_v38, %v853_v37  ;;  %v862_v56 = vrot.slane %v860_v39, 1  ;;  %1904 = vmatprep.subr.bf16.mxu0 %v1982_v28  ;;  %1926 = vmatprep.subr.bf16.mxu1 %v1982_v28 }
  0x33   : > { %v874_v57 = vrot.slane %v872_v40, 1  ;;  %v2279_v58 = vsel %vm2189_vm2, 0, %v720_v50  ;;  %v870_v61 = vor.u32 %v869_v43, %v865_v42  ;;  %v748_v62 = vor.u32 %v746_v27, %v745_v44  ;;  %v1883_v27 = vld [vmem:[%s536_s29] sm:$0xff]   ;;  %1905 = vmatpush3.bf16.msra.mxu0 %v1982_v28  ;;  %1929 = vmatpush3.bf16.msra.mxu1 %v1982_v28  ;;  %s2348_s29 = scalar_select %p565_p11, 1, 0 }
  0x34   : > { %v1873_v63 = vunpack.c.h.bf16 %v1890_v36  ;;  %v941_v3 = vrot.slane %v2279_v58, 1  ;;  %v851_v4 = vsel %vm827_vm5, %v846_v46, %v850_v47  ;;  %v2293_v5 = vsel %vm2189_vm2, %v745_v44, 0  ;;  %v1983_v47 = vld [vmem:[%s2770_s4 + $0x8] sm:$0xff]  }
  0x35   : > { %1111 = vrot.lane.b32.xlu0 %v2257_v32, %s2029_s26  ;;  %1065 = vrot.lane.b32.xlu1 %v2257_v32, %s2027_s25  ;;  %v682_v6 = vmax.f32 %v662_v52, 0.0  ;;  %v683_v7 = vmax.f32 %v663_v53, 0.0  ;;  %v637_v8 = vmul.f32 %v1872_v48, %v2137_v0  ;;  %v1876_v12 = vunpack.c.l.bf16 %v1891_v1 }
  0x36   : > { %v638_v10 = vmul.f32 %v1873_v63, %v2137_v0  ;;  %v943_v11 = vsel %vm940_vm3, %v941_v3, %v942_v54  ;;  %v1877_v13 = vunpack.c.h.bf16 %v1891_v1  ;;  %v2304_v14 = vsel %vm827_vm5, %v858_v55, %v862_v56  ;;  %1906 = vmatprep.subr.bf16.mxu0 %v1983_v47  ;;  %1927 = vmatprep.subr.bf16.mxu1 %v1983_v47 }
  0x37   : > { %v2307_v15 = vsel %vm827_vm5, %v870_v61, %v874_v57  ;;  %v2311_v16 = vsel %vm2189_vm2, 0, %v748_v62  ;;  %v664_v17 = vadd.f32 %v2148_v9, %v637_v8  ;;  %v831_v18 = vshll.u32 %v2279_v58, 16  ;;  %1907 = vmatpush3.bf16.msra.mxu0 %v1983_v47  ;;  %1930 = vmatpush3.bf16.msra.mxu1 %v1983_v47 }
  0x38   : > { %v877_v19 = vshrl.u32 %v2311_v16, 16  ;;  %v884_v20 = vshll.u32 %v2293_v5, 16  ;;  %v665_v21 = vadd.f32 %v2148_v9, %v638_v10  ;;  %v2319_v22 = vpack.c.bf16 %v683_v7, %v682_v6 }
  0x39   : > { %1113 = vrot.lane.b32.xlu0 %v2268_v45, %s2029_s26  ;;  %1015 = vrot.lane.b32.xlu1 %v943_v11, %s2028_s16  ;;  %v684_v23 = vmax.f32 %v664_v17, 0.0  ;;  %v639_v24 = vmul.f32 %v1876_v12, %v2137_v0  ;;  %v640_v25 = vmul.f32 %v1877_v13, %v2137_v0  ;;  %v836_v29 = vshll.u32 %v2272_v51, 16 }
  0x3a   : > { %v879_v30 = vshll.u32 %v2311_v16, 16  ;;  %v953_v31 = vrot.slane %v2311_v16, 1  ;;  %v954_v33 = vrot.slane %v2293_v5, 1  ;;  %v829_v34 = vshrl.u32 %v2279_v58, 16 }
  0x3b   : > { %v685_v35 = vmax.f32 %v665_v21, 0.0  ;;  %v666_v36 = vadd.f32 %v2148_v9, %v639_v24  ;;  %v667_v37 = vadd.f32 %v2148_v9, %v640_v25  ;;  %v833_v38 = vrot.slane %v831_v18, 1 }
  0x3c   : > { %v1880_v39 = vunpack.c.l.bf16 %v1892_v26  ;;  %v1881_v40 = vunpack.c.h.bf16 %v1892_v26  ;;  %v1884_v41 = vunpack.c.l.bf16 %v1883_v27  ;;  %v750_v42 = vshrl.u32 %v2319_v22, 16 }
  0x3d   : > { %1001 = vrot.lane.b32.xlu0 %v851_v4, %s2030_s17  ;;  %1049 = vrot.lane.b32.xlu1 %v2304_v14, %s2031_s27  ;;  %v710_v43 = vpack.c.bf16 %v685_v35, %v684_v23  ;;  %v686_v44 = vmax.f32 %v666_v36, 0.0  ;;  %v687_v46 = vmax.f32 %v667_v37, 0.0  ;;  %v838_v48 = vrot.slane %v836_v29, 1 }
  0x3e   : > { %v641_v50 = vmul.f32 %v1880_v39, %v2137_v0  ;;  %v642_v51 = vmul.f32 %v1881_v40, %v2137_v0  ;;  %v1885_v52 = vunpack.c.h.bf16 %v1883_v27  ;;  %v643_v56 = vmul.f32 %v1884_v41, %v2137_v0 }
  0x3f   : > { %v757_v53 = vshrl.u32 %v710_v43, 16  ;;  %v760_v54 = vshll.u32 %v710_v43, 16  ;;  %v711_v55 = vpack.c.bf16 %v687_v46, %v686_v44  ;;  %v834_v57 = vor.u32 %v833_v38, %v829_v34 }
  0x40   : > { %v668_v61 = vadd.f32 %v2148_v9, %v641_v50  ;;  %v669_v62 = vadd.f32 %v2148_v9, %v642_v51  ;;  %v644_v63 = vmul.f32 %v1885_v52, %v2137_v0  ;;  %v670_v6 = vadd.f32 %v2148_v9, %v643_v56 }
  0x41   : > { %1047 = vrot.lane.b32.xlu0 %v851_v4, %s2031_s27  ;;  %1097 = vrot.lane.b32.xlu1 %v2307_v15, %s2032_s28  ;;  %v759_v1 = vrot.slane %v757_v53, 7  ;;  %v764_v3 = vshrl.u32 %v711_v55, 16  ;;  %v767_v4 = vshll.u32 %v711_v55, 16  ;;  %v881_v7 = vrot.slane %v879_v30, 1 }
  0x42   : > { %v688_v8 = vmax.f32 %v668_v61, 0.0  ;;  %v689_v10 = vmax.f32 %v669_v62, 0.0  ;;  %v671_v11 = vadd.f32 %v2148_v9, %v644_v63  ;;  %v700_v17 = vstv %s2348_s29  ;;  %s576_s29 = scalar_lea.vmem %s2775_s9, %s2196_s10 }
  0x43   : > { %v762_v12 = vor.u32 %v760_v54, %v759_v1  ;;  %v2361_v0 = vsel %vm2189_vm2, %v759_v1, 0  ;;  %v766_v13 = vrot.slane %v764_v3, 7  ;;  %v752_v18 = vrot.slane %v750_v42, 7 }
  0x44   : > { %v753_v21 = vshll.u32 %v2319_v22, 16  ;;  %v960_v23 = vrot.slane %v2361_v0, 1  ;;  %v712_v9 = vpack.c.bf16 %v689_v10, %v688_v8  ;;  %v839_v24 = vsel %vm827_vm5, %v834_v57, %v838_v48  ;;  %v1984_v8 = vld [vmem:[%s2770_s4 + $0x10] ss:$0 sps:$4 sm:$0x33]  }
  0x45   : > { %1095 = vrot.lane.b32.xlu0 %v2304_v14, %s2032_s28  ;;  %1003 = vrot.lane.b32.xlu1 %v2304_v14, %s2030_s17  ;;  %v2371_v14 = vsel %vm2189_vm2, 0, %v762_v12  ;;  %v769_v25 = vor.u32 %v767_v4, %v766_v13  ;;  %v824_v26 = vsel %vm2189_vm2, %v766_v13, 0  ;;  %v690_v28 = vmax.f32 %v670_v6, 0.0 }
  0x46   : > { %v959_v27 = vrot.slane %v2371_v14, 1  ;;  %vm2376_vm6 = vcmp.eq.s32.totalorder %v700_v17, 1  ;;  %v920_v30 = vshll.u32 %v824_v26, 16  ;;  %v963_v34 = vrot.slane %v824_v26, 1  ;;  %1932 = vmatprep.subr.msk.bf16.mxu0 %vm1316_vm7, %v1984_v8  ;;  %1933 = vmatprep.subr.msk.bf16.mxu1 %vm1316_vm7, %v1984_v8 }
  0x47   : > { %v2384_v22 = vsel %vm2189_vm2, 0, %v769_v25  ;;  %v771_v35 = vshrl.u32 %v712_v9, 16  ;;  %v755_v36 = vor.u32 %v753_v21, %v752_v18  ;;  %v886_v40 = vrot.slane %v884_v20, 1 }
  0x48   : > { %v2388_v37 = vsel %vm940_vm3, %v959_v27, %v960_v23  ;;  %v913_v38 = vshrl.u32 %v2384_v22, 16  ;;  %v915_v39 = vshll.u32 %v2384_v22, 16  ;;  %v962_v41 = vrot.slane %v2384_v22, 1 }
  0x49   : > { %1019 = vrot.lane.b32.xlu0 %v2257_v32, %s2028_s16  ;;  %v691_v32 = vmax.f32 %v671_v11, 0.0  ;;  %1005 = vrot.lane.b32.xlu1 %v2307_v15, %s2030_s17  ;;  %v773_v42 = vrot.slane %v771_v35, 7  ;;  %v774_v43 = vshll.u32 %v712_v9, 16  ;;  %v922_v46 = vrot.slane %v920_v30, 1 }
  0x4a   : > { %v917_v44 = vrot.slane %v915_v39, 1  ;;  %v702_v47 = vsel %vm2376_vm6, %v690_v28, 0.0  ;;  %v2402_v50 = vsel %vm940_vm3, %v962_v41, %v963_v34  ;;  %v882_v53 = vor.u32 %v881_v7, %v877_v19 }
  0x4b   : > { %v703_v48 = vsel %vm2376_vm6, %v691_v32, 0.0  ;;  %v776_v51 = vor.u32 %v774_v43, %v773_v42  ;;  %v825_v20 = vsel %vm2189_vm2, %v773_v42, 0  ;;  %v2412_v54 = vsel %vm2189_vm2, 0, %v755_v36 }
  0x4c   : > { %v713_v52 = vpack.c.bf16 %v703_v48, %v702_v47  ;;  %v918_v55 = vor.u32 %v917_v44, %v913_v38  ;;  %v973_v56 = vshll.u32 %v825_v20, 16  ;;  %v980_v61 = vrot.slane %v825_v20, 1 }
  0x4d   : > { %999 = vrot.lane.b32.xlu0 %v839_v24, %s2030_s17  ;;  %1021 = vrot.lane.b32.xlu1 %v2268_v45, %s2028_s16  ;;  %v2416_v57 = vsel %vm2189_vm2, 0, %v776_v51  ;;  %v822_v4 = vsel %vm2189_vm2, %v752_v18, 0  ;;  %v887_v10 = vsel %vm827_vm5, %v882_v53, %v886_v40  ;;  %v891_v11 = vshll.u32 %v2412_v54, 16 }
  0x4e   : > { %v778_v62 = vshrl.u32 %v713_v52, 16  ;;  %v781_v63 = vshll.u32 %v713_v52, 16  ;;  %v2419_v1 = vsel %vm827_vm5, %v918_v55, %v922_v46  ;;  %v966_v3 = vshrl.u32 %v2416_v57, 16 }
  0x4f   : > { %v968_v19 = vshll.u32 %v2416_v57, 16  ;;  %v979_v6 = vrot.slane %v2416_v57, 1  ;;  %v975_v13 = vrot.slane %v973_v56, 1  ;;  %v955_v17 = vsel %vm940_vm3, %v953_v31, %v954_v33 }
  0x50   : > { %v780_v7 = vrot.slane %v778_v62, 7  ;;  %v896_v9 = vshll.u32 %v822_v4, 16  ;;  %v889_v25 = vshrl.u32 %v2412_v54, 16  ;;  %v1318_v33 = vsel %vm1316_vm7, %v1984_v8, 0 }
  0x51   : > { %1035 = vrot.lane.b32.xlu0 %v2227_v2, %s2025_s23  ;;  %1037 = vrot.lane.b32.xlu1 %v2311_v16, %s2025_s23  ;;  %v970_v12 = vrot.slane %v968_v19, 1  ;;  %v2441_v18 = vsel %vm940_vm3, %v979_v6, %v980_v61  ;;  %v893_v26 = vrot.slane %v891_v11, 1  ;;  %v956_v40 = vrot.slane %v2412_v54, 1 }
  0x52   : > { %v783_v21 = vor.u32 %v781_v63, %v780_v7  ;;  %v826_v23 = vsel %vm2189_vm2, %v780_v7, 0  ;;  %1909 = vmatpush3.bf16.msra.mxu0 %v1318_v33  ;;  %1931 = vmatpush3.bf16.msra.mxu1 %v1318_v33  ;;  %v898_v35 = vrot.slane %v896_v9, 1  ;;  %v957_v41 = vrot.slane %v822_v4, 1 }
  0x53   : > { %v971_v24 = vor.u32 %v970_v12, %v966_v3  ;;  %v997_v31 = vrot.slane %v826_v23, 1  ;;  %v903_v43 = vshll.u32 %v2371_v14, 16  ;;  %v901_v44 = vshrl.u32 %v2371_v14, 16 }
  0x54   : > { %v2449_v5 = vsel %vm2189_vm2, 0, %v783_v21  ;;  %v958_v42 = vsel %vm940_vm3, %v956_v40, %v957_v41  ;;  %v908_v47 = vshll.u32 %v2361_v0, 16 }
  0x55   : > { %1051 = vrot.lane.b32.xlu0 %v2307_v15, %s2031_s27  ;;  %v990_v15 = vshll.u32 %v826_v23, 16  ;;  %1053 = vrot.lane.b32.xlu1 %v887_v10, %s2031_s27  ;;  %v2454_v27 = vsel %vm827_vm5, %v971_v24, %v975_v13  ;;  %v983_v28 = vshrl.u32 %v2449_v5, 16  ;;  %v985_v32 = vshll.u32 %v2449_v5, 16 }
  0x56   : > { %v996_v29 = vrot.slane %v2449_v5, 1  ;;  %v905_v46 = vrot.slane %v903_v43, 1  ;;  %v910_v51 = vrot.slane %v908_v47, 1 }
  0x57   : > { %v987_v49 = vrot.slane %v985_v32, 1  ;;  %v992_v30 = vrot.slane %v990_v15, 1 }
  0x58   : > { %v998_v34 = vsel %vm940_vm3, %v996_v29, %v997_v31  ;;  %v906_v48 = vor.u32 %v905_v46, %v901_v44 }
  0x59   : > { %1067 = vrot.lane.b32.xlu0 %v2268_v45, %s2027_s25  ;;  %1069 = vrot.lane.b32.xlu1 %v955_v17, %s2027_s25  ;;  %v894_v45 = vor.u32 %v893_v26, %v889_v25  ;;  %v988_v36 = vor.u32 %v987_v49, %v983_v28 }
  0x5a   : > { %v911_v20 = vsel %vm827_vm5, %v906_v48, %v910_v51 }
  0x5b   : > { %v993_v38 = vsel %vm827_vm5, %v988_v36, %v992_v30  ;;  %v899_v39 = vsel %vm827_vm5, %v894_v45, %v898_v35 }
  0x5d   : > { %1083 = vrot.lane.b32.xlu0 %v2311_v16, %s2026_s21  ;;  %1085 = vrot.lane.b32.xlu1 %v2412_v54, %s2026_s21 }
  0x61   : > { %1099 = vrot.lane.b32.xlu0 %v887_v10, %s2032_s28  ;;  %1101 = vrot.lane.b32.xlu1 %v899_v39, %s2032_s28 }
  0x65   : > { %1115 = vrot.lane.b32.xlu0 %v955_v17, %s2029_s26  ;;  %1007 = vrot.lane.b32.xlu1 %v887_v10, %s2030_s17 }
  0x69   : > { %1117 = vrot.lane.b32.xlu0 %v958_v42, %s2029_s26  ;;  %1009 = vrot.lane.b32.xlu1 %v899_v39, %s2030_s17 }
  0x6d   : > { %1023 = vrot.lane.b32.xlu0 %v955_v17, %s2028_s16  ;;  %1025 = vrot.lane.b32.xlu1 %v958_v42, %s2028_s16 }
  0x71   : > { %1039 = vrot.lane.b32.xlu0 %v2412_v54, %s2025_s23  ;;  %1041 = vrot.lane.b32.xlu1 %v2371_v14, %s2025_s23 }
  0x75   : > { %1055 = vrot.lane.b32.xlu0 %v899_v39, %s2031_s27  ;;  %1057 = vrot.lane.b32.xlu1 %v911_v20, %s2031_s27 }
  0x79   : > { %1071 = vrot.lane.b32.xlu0 %v958_v42, %s2027_s25  ;;  %1073 = vrot.lane.b32.xlu1 %v2388_v37, %s2027_s25 }
  0x7d   : > { %1087 = vrot.lane.b32.xlu0 %v2371_v14, %s2026_s21  ;;  %1089 = vrot.lane.b32.xlu1 %v2384_v22, %s2026_s21 }
  0x81   : > { %1103 = vrot.lane.b32.xlu0 %v911_v20, %s2032_s28  ;;  %1105 = vrot.lane.b32.xlu1 %v2419_v1, %s2032_s28 }
  0x85   : > { %1119 = vrot.lane.b32.xlu0 %v2388_v37, %s2029_s26  ;;  %1011 = vrot.lane.b32.xlu1 %v911_v20, %s2030_s17 }
  0x89   : > { %1121 = vrot.lane.b32.xlu0 %v2402_v50, %s2029_s26  ;;  %1013 = vrot.lane.b32.xlu1 %v2419_v1, %s2030_s17 }
  0x8d   : > { %1027 = vrot.lane.b32.xlu0 %v2388_v37, %s2028_s16  ;;  %1029 = vrot.lane.b32.xlu1 %v2402_v50, %s2028_s16 }
  0x91   : > { %1043 = vrot.lane.b32.xlu0 %v2384_v22, %s2025_s23  ;;  %1045 = vrot.lane.b32.xlu1 %v2416_v57, %s2025_s23  ;;  %s1822_s23 = sshll.u32 %s2126_s20, 3 }
  0x92   : > { %s2614_s16 = scalar_lea.vmem %s2769_s3, %s1822_s23  ;;  %s2621_s19 = scalar_lea.vmem %s2773_s7, %s1822_s23 }
  0x95   : > { %1059 = vrot.lane.b32.xlu0 %v2419_v1, %s2031_s27  ;;  %1061 = vrot.lane.b32.xlu1 %v2454_v27, %s2031_s27 }
  0x99   : > { %1075 = vrot.lane.b32.xlu0 %v2402_v50, %s2027_s25  ;;  %1077 = vrot.lane.b32.xlu1 %v2441_v18, %s2027_s25 }
  0x9b   : > { %v1034_v0 = vpop.permute.xlu1 %1033  ;;  %v1032_v37 = vpop.permute.xlu0 %1031 }
  0x9d   : > { %1091 = vrot.lane.b32.xlu0 %v2416_v57, %s2026_s21  ;;  %1093 = vrot.lane.b32.xlu1 %v2449_v5, %s2026_s21 }
  0x9f   : > { %v1082_v52 = vpop.permute.xlu1 %1081  ;;  %v1080_v53 = vpop.permute.xlu0 %1079 }
  0xa1   : > { %1107 = vrot.lane.b32.xlu0 %v2454_v27, %s2032_s28  ;;  %1109 = vrot.lane.b32.xlu1 %v993_v38, %s2032_s28 }
  0xa3   : > { %v1064_v55 = vpop.permute.xlu0 %1063  ;;  %v1018_v56 = vpop.permute.xlu1 %1017 }
  0xa5   : > { %1123 = vrot.lane.b32.xlu0 %v2441_v18, %s2029_s26  ;;  %1125 = vrot.lane.b32.xlu1 %v998_v34, %s2029_s26 }
  0xa7   : > { %v1112_v50 = vpop.permute.xlu0 %1111  ;;  %v1066_v61 = vpop.permute.xlu1 %1065 }
  0xab   : > { %v1114_v57 = vpop.permute.xlu0 %1113  ;;  %v1016_v62 = vpop.permute.xlu1 %1015 }
  0xaf   : > { %v1002_v63 = vpop.permute.xlu0 %1001  ;;  %v1050_v1 = vpop.permute.xlu1 %1049 }
  0xb0   : > { %v1131_v3 = vsel %vm1127_vm8, %v2210_v60, %v1002_v63 }
  0xb1   : > { %v1148_v4 = vsel %vm1144_vm9, %v1131_v3, %v1018_v56 }
  0xb2   : > { %v1165_v8 = vsel %vm1161_vm10, %v1148_v4, %v1034_v0 }
  0xb3   : > { %v1048_v19 = vpop.permute.xlu0 %1047  ;;  %v1098_v6 = vpop.permute.xlu1 %1097  ;;  %v1182_v12 = vsel %vm1178_vm11, %v1165_v8, %v1050_v1 }
  0xb4   : > { %v1199_v17 = vsel %vm1195_vm12, %v1182_v12, %v1066_v61 }
  0xb5   : > { %v1216_v23 = vsel %vm1212_vm13, %v1199_v17, %v1082_v52 }
  0xb6   : > { %v1233_v31 = vsel %vm1229_vm14, %v1216_v23, %v1098_v6 }
  0xb7   : > { %v1096_v7 = vpop.permute.xlu0 %1095  ;;  %v1004_v10 = vpop.permute.xlu1 %1003  ;;  %v1250_v32 = vsel %vm1246_vm15, %v1233_v31, %v1114_v57 }
  0xb8   : > { %v1133_v45 = vsel %vm1127_vm8, %v2206_v59, %v1004_v10 }
  0xbb   : > { %v1020_v11 = vpop.permute.xlu0 %1019  ;;  %v1006_v13 = vpop.permute.xlu1 %1005 }
  0xbc   : > { %v1150_v35 = vsel %vm1144_vm9, %v1133_v45, %v1020_v11  ;;  %v1135_v41 = vsel %vm1127_vm8, %v2227_v2, %v1006_v13 }
  0xbf   : > { %v1000_v18 = vpop.permute.xlu0 %999  ;;  %v1022_v9 = vpop.permute.xlu1 %1021 }
  0xc0   : > { %v1129_v60 = vsel %vm1127_vm8, %v2279_v58, %v1000_v18  ;;  %v1152_v43 = vsel %vm1144_vm9, %v1135_v41, %v1022_v9 }
  0xc1   : > { %v1146_v21 = vsel %vm1144_vm9, %v1129_v60, %v1016_v62 }
  0xc2   : > { %v1163_v24 = vsel %vm1161_vm10, %v1146_v21, %v1032_v37 }
  0xc3   : > { %v1180_v15 = vsel %vm1178_vm11, %v1163_v24, %v1048_v19  ;;  %v1036_v25 = vpop.permute.xlu0 %1035  ;;  %v1038_v58 = vpop.permute.xlu1 %1037 }
  0xc4   : > { %v1197_v5 = vsel %vm1195_vm12, %v1180_v15, %v1064_v55  ;;  %v1167_v38 = vsel %vm1161_vm10, %v1150_v35, %v1036_v25  ;;  %v1169_v59 = vsel %vm1161_vm10, %v1152_v43, %v1038_v58 }
  0xc5   : > { %v1214_v33 = vsel %vm1212_vm13, %v1197_v5, %v1080_v53 }
  0xc6   : > { %v1231_v26 = vsel %vm1229_vm14, %v1214_v33, %v1096_v7 }
  0xc7   : > { %v1052_v27 = vpop.permute.xlu0 %1051  ;;  %v1248_v28 = vsel %vm1246_vm15, %v1231_v26, %v1112_v50  ;;  %v1054_v29 = vpop.permute.xlu1 %1053 }
  0xc8   : > { %1910 = vmatprep.mubr.msk.bf16.mxu0 %vm1299_vm0, %v1248_v28  ;;  %v1184_v40 = vsel %vm1178_vm11, %v1167_v38, %v1052_v27  ;;  %v1186_v51 = vsel %vm1178_vm11, %v1169_v59, %v1054_v29 }
  0xc9   : > { %1911 = vmatmul.mubr.msk.bf16.vlgmr.msra.gmra.mrb[0].mxu0 %vm1299_vm0, %v1250_v32 }
  0xcb   : > { %v1068_v49 = vpop.permute.xlu0 %1067  ;;  %v1070_v30 = vpop.permute.xlu1 %1069 }
  0xcc   : > { %v1201_v42 = vsel %vm1195_vm12, %v1184_v40, %v1068_v49  ;;  %v1203_v0 = vsel %vm1195_vm12, %v1186_v51, %v1070_v30 }
  0xcf   : > { %v1084_v34 = vpop.permute.xlu0 %1083  ;;  %v1086_v36 = vpop.permute.xlu1 %1085 }
  0xd0   : > { %v1218_v44 = vsel %vm1212_vm13, %v1201_v42, %v1084_v34  ;;  %v1220_v2 = vsel %vm1212_vm13, %v1203_v0, %v1086_v36 }
  0xd3   : > { %v1100_v39 = vpop.permute.xlu0 %1099  ;;  %v1102_v46 = vpop.permute.xlu1 %1101 }
  0xd4   : > { %v1235_v47 = vsel %vm1229_vm14, %v1218_v44, %v1100_v39  ;;  %v1237_v52 = vsel %vm1229_vm14, %v1220_v2, %v1102_v46 }
  0xd7   : > { %v1116_v48 = vpop.permute.xlu0 %1115  ;;  %v1008_v37 = vpop.permute.xlu1 %1007 }
  0xd8   : > { %v1252_v20 = vsel %vm1246_vm15, %v1235_v47, %v1116_v48  ;;  %v1137_v6 = vsel %vm1127_vm8, %v2311_v16, %v1008_v37 }
  0xd9   : > { %1914 = vmatprep.mubr.msk.bf16.mxu0 %vm1299_vm0, %v1252_v20 }
  0xdb   : > { %v1118_v53 = vpop.permute.xlu0 %1117  ;;  %v1010_v56 = vpop.permute.xlu1 %1009 }
  0xdc   : > { %v1254_v55 = vsel %vm1246_vm15, %v1237_v52, %v1118_v53  ;;  %v1139_v13 = vsel %vm1127_vm8, %v2412_v54, %v1010_v56  ;;  %v1268_v56 = vld [vmem:[%s2614_s16] sm:$0xff] }
  0xdd   : > { %1915 = vmatmul.mubr.msk.bf16.gmra.mrb[4].mxu0 %vm1299_vm0, %v1254_v55  ;;  %v1270_v55 = vld [vmem:[%s2614_s16 + $0x10] sm:$0xff] }
  0xdf   : > { %v1024_v50 = vpop.permute.xlu0 %1023  ;;  %v1026_v61 = vpop.permute.xlu1 %1025 }
  0xe0   : > { %v1154_v7 = vsel %vm1144_vm9, %v1137_v6, %v1024_v50  ;;  %v1156_v18 = vsel %vm1144_vm9, %v1139_v13, %v1026_v61  ;;  %v1271_v61 = vld [vmem:[%s2614_s16 + $0x18] sm:$0xff] }
  0xe3   : > { %v1040_v57 = vpop.permute.xlu0 %1039  ;;  %v1042_v62 = vpop.permute.xlu1 %1041 }
  0xe4   : > { %v1171_v10 = vsel %vm1161_vm10, %v1154_v7, %v1040_v57  ;;  %v1173_v16 = vsel %vm1161_vm10, %v1156_v18, %v1042_v62  ;;  %v1274_v7 = vld [vmem:[%s2614_s16 + $0x30] sm:$0xff] }
  0xe7   : > { %v1056_v63 = vpop.permute.xlu0 %1055  ;;  %v1058_v1 = vpop.permute.xlu1 %1057 }
  0xe8   : > { %v1188_v12 = vsel %vm1178_vm11, %v1171_v10, %v1056_v63  ;;  %v1190_v24 = vsel %vm1178_vm11, %v1173_v16, %v1058_v1  ;;  %v1269_v63 = vld [vmem:[%s2614_s16 + $0x8] sm:$0xff] }
  0xeb   : > { %v1072_v3 = vpop.permute.xlu0 %1071  ;;  %v1074_v19 = vpop.permute.xlu1 %1073 }
  0xec   : > { %v1205_v17 = vsel %vm1195_vm12, %v1188_v12, %v1072_v3  ;;  %v1207_v25 = vsel %vm1195_vm12, %v1190_v24, %v1074_v19 }
  0xef   : > { %v1088_v4 = vpop.permute.xlu0 %1087  ;;  %v1090_v8 = vpop.permute.xlu1 %1089 }
  0xf0   : > { %v1222_v60 = vsel %vm1212_vm13, %v1205_v17, %v1088_v4  ;;  %v1224_v54 = vsel %vm1212_vm13, %v1207_v25, %v1090_v8  ;;  %v1272_v8 = vld [vmem:[%s2614_s16 + $0x20] sm:$0xff]  ;;  %v1273_v17 = vld [vmem:[%s2614_s16 + $0x28] sm:$0xff] }
  0xf3   : > { %v1104_v11 = vpop.permute.xlu0 %1103  ;;  %v1106_v21 = vpop.permute.xlu1 %1105 }
  0xf4   : > { %v1239_v23 = vsel %vm1229_vm14, %v1222_v60, %v1104_v11  ;;  %v1241_v31 = vsel %vm1229_vm14, %v1224_v54, %v1106_v21  ;;  %v1275_v11 = vld [vmem:[%s2614_s16 + $0x38] sm:$0xff] }
  0xf7   : > { %v1120_v9 = vpop.permute.xlu0 %1119  ;;  %v1012_v5 = vpop.permute.xlu1 %1011 }
  0xf8   : > { %v1256_v15 = vsel %vm1246_vm15, %v1239_v23, %v1120_v9  ;;  %v1141_v36 = vsel %vm1127_vm8, %v2371_v14, %v1012_v5 }
  0xf9   : > { %1918 = vmatprep.mubr.msk.bf16.mxu1 %vm1299_vm0, %v1256_v15 }
  0xfb   : > { %v1122_v33 = vpop.permute.xlu0 %1121  ;;  %v1014_v26 = vpop.permute.xlu1 %1013 }
  0xfc   : > { %v1258_v58 = vsel %vm1246_vm15, %v1241_v31, %v1122_v33  ;;  %v1143_v42 = vsel %vm1127_vm8, %v2384_v22, %v1014_v26 }
  0xfd   : > { %1919 = vmatmul.mubr.msk.bf16.vlgmr.msra.gmra.mrb[0].mxu1 %vm1299_vm0, %v1258_v58 }
  0xff   : > { %v1028_v27 = vpop.permute.xlu0 %1027  ;;  %v1030_v28 = vpop.permute.xlu1 %1029 }
 0x100   : > { %v1158_v38 = vsel %vm1144_vm9, %v1141_v36, %v1028_v27  ;;  %v1160_v44 = vsel %vm1144_vm9, %v1143_v42, %v1030_v28  ;;  %v1277_v36 = vld [vmem:[%s2614_s16 + $0x48] sm:$0xff] }
 0x103   : > { %v1044_v32 = vpop.permute.xlu0 %1043  ;;  %v1046_v29 = vpop.permute.xlu1 %1045 }
 0x104   : > { %v1175_v40 = vsel %vm1161_vm10, %v1158_v38, %v1044_v32  ;;  %v1177_v59 = vsel %vm1161_vm10, %v1160_v44, %v1046_v29  ;;  %v1278_v32 = vld [vmem:[%s2614_s16 + $0x50] sm:$0xff] }
 0x107   : > { %v1060_v49 = vpop.permute.xlu0 %1059  ;;  %v1062_v30 = vpop.permute.xlu1 %1061 }
 0x108   : > { %v1192_v43 = vsel %vm1178_vm11, %v1175_v40, %v1060_v49  ;;  %v1194_v48 = vsel %vm1178_vm11, %v1177_v59, %v1062_v30  ;;  %v1276_v49 = vld [vmem:[%s2614_s16 + $0x40] sm:$0xff] }
 0x10b   : > { %v1076_v34 = vpop.permute.xlu0 %1075  ;;  %v1078_v45 = vpop.permute.xlu1 %1077 }
 0x10c   : > { %v1209_v46 = vsel %vm1195_vm12, %v1192_v43, %v1076_v34  ;;  %v1211_v0 = vsel %vm1195_vm12, %v1194_v48, %v1078_v45  ;;  %v1279_v34 = vld [vmem:[%s2614_s16 + $0x58] sm:$0xff] }
 0x10f   : > { %v1092_v35 = vpop.permute.xlu0 %1091  ;;  %v1094_v39 = vpop.permute.xlu1 %1093 }
 0x110   : > { %v1226_v14 = vsel %vm1212_vm13, %v1209_v46, %v1092_v35  ;;  %v1228_v2 = vsel %vm1212_vm13, %v1211_v0, %v1094_v39 }
 0x113   : > { %v1108_v41 = vpop.permute.xlu0 %1107  ;;  %v1110_v47 = vpop.permute.xlu1 %1109 }
 0x114   : > { %v1243_v51 = vsel %vm1229_vm14, %v1226_v14, %v1108_v41  ;;  %v1245_v37 = vsel %vm1229_vm14, %v1228_v2, %v1110_v47  ;;  %v1280_v2 = vld [vmem:[%s2614_s16 + $0x60] sm:$0xff] }
 0x117   : > { %v1124_v20 = vpop.permute.xlu0 %1123  ;;  %v1126_v52 = vpop.permute.xlu1 %1125 }
 0x118   : > { %v1260_v22 = vsel %vm1246_vm15, %v1243_v51, %v1124_v20  ;;  %v1262_v53 = vsel %vm1246_vm15, %v1245_v37, %v1126_v52  ;;  %v1283_v52 = vld [vmem:[%s2614_s16 + $0x78] sm:$0xff] }
 0x119   : > { %1922 = vmatprep.mubr.msk.bf16.mxu1 %vm1299_vm0, %v1260_v22  ;;  %v1282_v22 = vld [vmem:[%s2614_s16 + $0x70] sm:$0xff] }
 0x11a   : > { %1923 = vmatmul.mubr.msk.bf16.gmra.mrb[4].mxu1 %vm1299_vm0, %v1262_v53 }
 0x19c   : > { %v1912_v50 = vpop.f32.mrb[0].mxu0 }
 0x19d   : > { %v2624_v57 = vadd.f32 %v1912_v50, %v1270_v55  ;;  %v1354_v62 = vpop.f32.mrb[1].mxu0 }
 0x19e   : > { %v2627_v1 = vadd.f32 %v1354_v62, %v1268_v56  ;;  %v1913_v3 = vpop.f32.mrb[2].mxu0  ;;  %v1281_v56 = vld [vmem:[%s2614_s16 + $0x68] sm:$0xff] }
 0x19f   : > { %1419 = vst.msk [vmem:[%s2621_s19 + $0x10] sm:$0xff] %vm1127_vm8, %v2624_v57  ;;  %v2632_v19 = vadd.f32 %v1913_v3, %v1271_v61  ;;  %v1357_v4 = vpop.f32.mrb[3].mxu0  ;;  %v1436_v25 = vsel %vm1127_vm8, %v2624_v57, 0.0 }
 0x1a0   : > { %1417 = vst.msk [vmem:[%s2621_s19] sm:$0xff] %vm1127_vm8, %v2627_v1  ;;  %v2637_v6 = vadd.f32 %v1357_v4, %v1269_v63  ;;  %v1433_v24 = vsel %vm1127_vm8, %v2627_v1, 0.0 }
 0x1a1   : > { %1420 = vst.msk [vmem:[%s2621_s19 + $0x18] sm:$0xff] %vm1127_vm8, %v2632_v19  ;;  %v1438_v5 = vsel %vm1127_vm8, %v2632_v19, 0.0 }
 0x1a2   : > { %1418 = vst.msk [vmem:[%s2621_s19 + $0x8] sm:$0xff] %vm1127_vm8, %v2637_v6  ;;  %v1434_v9 = vsel %vm1127_vm8, %v2637_v6, 0.0 }
 0x1a3   : > { %v1435_v15 = vadd.f32 %v1434_v9, %v1433_v24 }
 0x1a5   : > { %v1437_v54 = vadd.f32 %v1436_v25, %v1435_v15 }
 0x1a7   : > { %v1439_v33 = vadd.f32 %v1438_v5, %v1437_v54 }
 0x1b0   : > { %v1916_v10 = vpop.f32.mrb[4].mxu0 }
 0x1b1   : > { %v2648_v12 = vadd.f32 %v1916_v10, %v1274_v7  ;;  %v1370_v13 = vpop.f32.mrb[5].mxu0 }
 0x1b2   : > { %v2651_v18 = vadd.f32 %v1370_v13, %v1272_v8  ;;  %v1917_v60 = vpop.f32.mrb[6].mxu0 }
 0x1b3   : > { %1423 = vst.msk [vmem:[%s2621_s19 + $0x30] sm:$0xff] %vm1127_vm8, %v2648_v12  ;;  %v2656_v21 = vadd.f32 %v1917_v60, %v1275_v11  ;;  %v1373_v16 = vpop.f32.mrb[7].mxu0  ;;  %v1444_v28 = vsel %vm1127_vm8, %v2648_v12, 0.0 }
 0x1b4   : > { %1421 = vst.msk [vmem:[%s2621_s19 + $0x20] sm:$0xff] %vm1127_vm8, %v2651_v18  ;;  %v2661_v23 = vadd.f32 %v1373_v16, %v1273_v17  ;;  %v1440_v31 = vsel %vm1127_vm8, %v2651_v18, 0.0 }
 0x1b5   : > { %1424 = vst.msk [vmem:[%s2621_s19 + $0x38] sm:$0xff] %vm1127_vm8, %v2656_v21  ;;  %v1441_v58 = vadd.f32 %v1440_v31, %v1439_v33  ;;  %v1446_v38 = vsel %vm1127_vm8, %v2656_v21, 0.0 }
 0x1b6   : > { %1422 = vst.msk [vmem:[%s2621_s19 + $0x28] sm:$0xff] %vm1127_vm8, %v2661_v23  ;;  %v1442_v26 = vsel %vm1127_vm8, %v2661_v23, 0.0 }
 0x1b7   : > { %v1443_v27 = vadd.f32 %v1442_v26, %v1441_v58 }
 0x1b9   : > { %v1445_v29 = vadd.f32 %v1444_v28, %v1443_v27 }
 0x1bb   : > { %v1447_v41 = vadd.f32 %v1446_v38, %v1445_v29 }
 0x1d0   : > { %v1920_v30 = vpop.f32.mrb[0].mxu1 }
 0x1d1   : > { %v1395_v45 = vadd.f32 %v1920_v30, %v1278_v32  ;;  %v1386_v35 = vpop.f32.mrb[1].mxu1 }
 0x1d2   : > { %v1387_v39 = vadd.f32 %v1386_v35, %v1276_v49  ;;  %v1921_v40 = vpop.f32.mrb[2].mxu1 }
 0x1d3   : > { %1427 = vst.msk [vmem:[%s2621_s19 + $0x50] sm:$0xff] %vm1127_vm8, %v1395_v45  ;;  %v1398_v42 = vadd.f32 %v1921_v40, %v1279_v34  ;;  %v1389_v43 = vpop.f32.mrb[3].mxu1  ;;  %v1452_v48 = vsel %vm1127_vm8, %v1395_v45, 0.0 }
 0x1d4   : > { %1425 = vst.msk [vmem:[%s2621_s19 + $0x40] sm:$0xff] %vm1127_vm8, %v1387_v39  ;;  %v1448_v44 = vsel %vm1127_vm8, %v1387_v39, 0.0  ;;  %v1390_v46 = vadd.f32 %v1389_v43, %v1277_v36 }
 0x1d5   : > { %v1449_v59 = vadd.f32 %v1448_v44, %v1447_v41  ;;  %1428 = vst.msk [vmem:[%s2621_s19 + $0x58] sm:$0xff] %vm1127_vm8, %v1398_v42  ;;  %v1454_v20 = vsel %vm1127_vm8, %v1398_v42, 0.0 }
 0x1d6   : > { %1426 = vst.msk [vmem:[%s2621_s19 + $0x48] sm:$0xff] %vm1127_vm8, %v1390_v46  ;;  %v1450_v14 = vsel %vm1127_vm8, %v1390_v46, 0.0 }
 0x1d7   : > { %v1451_v47 = vadd.f32 %v1450_v14, %v1449_v59 }
 0x1d9   : > { %v1453_v51 = vadd.f32 %v1452_v48, %v1451_v47 }
 0x1db   : > { %v1455_v0 = vadd.f32 %v1454_v20, %v1453_v51 }
 0x1ed   : > { %v1924_v37 = vpop.f32.mrb[4].mxu1 }
 0x1ee   : > { %v1411_v53 = vadd.f32 %v1924_v37, %v1282_v22  ;;  %v1402_v55 = vpop.f32.mrb[5].mxu1 }
 0x1ef   : > { %v1403_v50 = vadd.f32 %v1402_v55, %v1280_v2  ;;  %v1925_v61 = vpop.f32.mrb[6].mxu1 }
 0x1f0   : > { %1431 = vst.msk [vmem:[%s2621_s19 + $0x70] sm:$0xff] %vm1127_vm8, %v1411_v53  ;;  %v1414_v62 = vadd.f32 %v1925_v61, %v1283_v52  ;;  %v1405_v63 = vpop.f32.mrb[7].mxu1  ;;  %v1460_v11 = vsel %vm1127_vm8, %v1411_v53, 0.0 }
 0x1f1   : > { %1429 = vst.msk [vmem:[%s2621_s19 + $0x60] sm:$0xff] %vm1127_vm8, %v1403_v50  ;;  %v1456_v3 = vsel %vm1127_vm8, %v1403_v50, 0.0  ;;  %v1406_v4 = vadd.f32 %v1405_v63, %v1281_v56 }
 0x1f2   : > { %v1457_v7 = vadd.f32 %v1456_v3, %v1455_v0  ;;  %1432 = vst.msk [vmem:[%s2621_s19 + $0x78] sm:$0xff] %vm1127_vm8, %v1414_v62  ;;  %v1462_v17 = vsel %vm1127_vm8, %v1414_v62, 0.0 }
 0x1f3   : > { %1430 = vst.msk [vmem:[%s2621_s19 + $0x68] sm:$0xff] %vm1127_vm8, %v1406_v4  ;;  %v1458_v8 = vsel %vm1127_vm8, %v1406_v4, 0.0 }
 0x1f4   : > { %v1459_v10 = vadd.f32 %v1458_v8, %v1457_v7 }
 0x1f6   : > { %v1461_v13 = vadd.f32 %v1460_v11, %v1459_v10 }
 0x1f8   : > { %v1463_v60 = vadd.f32 %v1462_v17, %v1461_v13 }
 0x1fa   : > { %v1464_v16 = vrot.slane %v1463_v60, 4 }
 0x1fc   : > { %v1465_v9 = vadd.f32 %v1464_v16, %v1463_v60 }
 0x1fe   : > { %v1466_v24 = vrot.slane %v1465_v9, 2 }
 0x200   : > { %v1467_v15 = vadd.f32 %v1466_v24, %v1465_v9 }
 0x202   : > { %v1468_v25 = vrot.slane %v1467_v15, 1 }
 0x204   : > { %v1469_v54 = vadd.f32 %v1468_v25, %v1467_v15 }
 0x206   : > { %v1470_v5 = vmul.f32 0.0078125, %v1469_v54  ;;  %1541 = vst.msk [vmem:[%s569_s24] sm:$0x1] %vm1540_vm1, %v1469_v54 }
 0x208   : > { %v1471_v31 = vsub.f32 %v2627_v1, %v1470_v5  ;;  %v1472_v33 = vsub.f32 %v2637_v6, %v1470_v5  ;;  %v1473_v58 = vsub.f32 %v2624_v57, %v1470_v5  ;;  %v1479_v26 = vsub.f32 %v1387_v39, %v1470_v5 }
 0x209   : > { %v1480_v27 = vsub.f32 %v1390_v46, %v1470_v5  ;;  %v1481_v28 = vsub.f32 %v1395_v45, %v1470_v5  ;;  %v1482_v32 = vsub.f32 %v1398_v42, %v1470_v5  ;;  %v1483_v29 = vsub.f32 %v1403_v50, %v1470_v5 }
 0x20a   : > { %v1484_v49 = vsub.f32 %v1406_v4, %v1470_v5  ;;  %v1485_v30 = vsub.f32 %v1411_v53, %v1470_v5  ;;  %v1486_v34 = vsub.f32 %v1414_v62, %v1470_v5  ;;  %v1474_v35 = vsub.f32 %v2632_v19, %v1470_v5 }
 0x20b   : > { %v1487_v36 = vmul.f32 %v1471_v31, %v1471_v31  ;;  %v1488_v38 = vmul.f32 %v1472_v33, %v1472_v33  ;;  %v1475_v40 = vsub.f32 %v2651_v18, %v1470_v5  ;;  %v1489_v41 = vmul.f32 %v1473_v58, %v1473_v58 }
 0x20c   : > { %v1476_v1 = vsub.f32 %v2661_v23, %v1470_v5  ;;  %v1490_v6 = vmul.f32 %v1474_v35, %v1474_v35  ;;  %v1477_v42 = vsub.f32 %v2648_v12, %v1470_v5  ;;  %v1478_v19 = vsub.f32 %v2656_v21, %v1470_v5 }
 0x20d   : > { %v1503_v57 = vsel %vm1127_vm8, %v1487_v36, 0.0  ;;  %v1504_v39 = vsel %vm1127_vm8, %v1488_v38, 0.0  ;;  %v1491_v43 = vmul.f32 %v1475_v40, %v1475_v40  ;;  %v1506_v44 = vsel %vm1127_vm8, %v1489_v41, 0.0 }
 0x20e   : > { %v1505_v45 = vadd.f32 %v1504_v39, %v1503_v57  ;;  %v1492_v59 = vmul.f32 %v1476_v1, %v1476_v1  ;;  %v1508_v18 = vsel %vm1127_vm8, %v1490_v6, 0.0  ;;  %v1493_v47 = vmul.f32 %v1477_v42, %v1477_v42 }
 0x20f   : > { %v1510_v23 = vsel %vm1127_vm8, %v1491_v43, 0.0  ;;  %v1494_v51 = vmul.f32 %v1478_v19, %v1478_v19  ;;  %v1495_v22 = vmul.f32 %v1479_v26, %v1479_v26  ;;  %v1496_v37 = vmul.f32 %v1480_v27, %v1480_v27 }
 0x210   : > { %v1507_v46 = vadd.f32 %v1506_v44, %v1505_v45  ;;  %v1512_v20 = vsel %vm1127_vm8, %v1492_v59, 0.0  ;;  %v1514_v12 = vsel %vm1127_vm8, %v1493_v47, 0.0  ;;  %v1497_v53 = vmul.f32 %v1481_v28, %v1481_v28 }
 0x211   : > { %v1516_v52 = vsel %vm1127_vm8, %v1494_v51, 0.0  ;;  %v1518_v55 = vsel %vm1127_vm8, %v1495_v22, 0.0  ;;  %v1498_v50 = vmul.f32 %v1482_v32, %v1482_v32  ;;  %v1520_v61 = vsel %vm1127_vm8, %v1496_v37, 0.0 }
 0x212   : > { %v1509_v14 = vadd.f32 %v1508_v18, %v1507_v46  ;;  %v1499_v63 = vmul.f32 %v1483_v29, %v1483_v29  ;;  %v1522_v3 = vsel %vm1127_vm8, %v1497_v53, 0.0  ;;  %v1500_v7 = vmul.f32 %v1484_v49, %v1484_v49 }
 0x213   : > { %v1524_v8 = vsel %vm1127_vm8, %v1498_v50, 0.0  ;;  %v1501_v11 = vmul.f32 %v1485_v30, %v1485_v30  ;;  %v1502_v60 = vmul.f32 %v1486_v34, %v1486_v34 }
 0x214   : > { %v1511_v48 = vadd.f32 %v1510_v23, %v1509_v14  ;;  %v1526_v13 = vsel %vm1127_vm8, %v1499_v63, 0.0  ;;  %v1528_v16 = vsel %vm1127_vm8, %v1500_v7, 0.0 }
 0x215   : > { %v1530_v24 = vsel %vm1127_vm8, %v1501_v11, 0.0  ;;  %v1532_v25 = vsel %vm1127_vm8, %v1502_v60, 0.0 }
 0x216   : > { %v1513_v0 = vadd.f32 %v1512_v20, %v1511_v48 }
 0x218   : > { %v1515_v2 = vadd.f32 %v1514_v12, %v1513_v0 }
 0x21a   : > { %v1517_v21 = vadd.f32 %v1516_v52, %v1515_v2 }
 0x21c   : > { %v1519_v56 = vadd.f32 %v1518_v55, %v1517_v21 }
 0x21e   : > { %v1521_v62 = vadd.f32 %v1520_v61, %v1519_v56 }
 0x220   : > { %v1523_v4 = vadd.f32 %v1522_v3, %v1521_v62 }
 0x222   : > { %v1525_v10 = vadd.f32 %v1524_v8, %v1523_v4 }
 0x224   : > { %v1527_v17 = vadd.f32 %v1526_v13, %v1525_v10 }
 0x226   : > { %v1529_v9 = vadd.f32 %v1528_v16, %v1527_v17 }
 0x228   : > { %v1531_v15 = vadd.f32 %v1530_v24, %v1529_v9 }
 0x22a   : > { %v1533_v54 = vadd.f32 %v1532_v25, %v1531_v15 }
 0x22c   : > { %v1534_v5 = vrot.slane %v1533_v54, 4 }
 0x22e   : > { %v1535_v31 = vadd.f32 %v1534_v5, %v1533_v54 }
 0x230   : > { %v1536_v33 = vrot.slane %v1535_v31, 2 }
 0x232   : > { %v1537_v58 = vadd.f32 %v1536_v33, %v1535_v31 }
 0x234   : > { %v1538_v26 = vrot.slane %v1537_v58, 1 }
 0x236   : > { %v1539_v27 = vadd.f32 %v1538_v26, %v1537_v58 }
 0x238   : > { %1542 = vst.msk [vmem:[%s576_s29] sm:$0x1] %vm1540_vm1, %v1539_v27 }
 0x239 PF: > { %s20_s13 = sadd.s32 1, %s2023_s13   ;;  %s2783_s30 = smov %s2015_s11 }
 0x23a   : > { %p17_p12 = scmp.ge.s32.totalorder %s20_s13, 6   ;;  %s2784_s10 = smov %s2019_s12 }
 0x23b   : > { %s2785_s11 = smov %s2788_s14  ;;  %s2786_s12 = smov %s2792_s15 }
 0x23c   :  { %19 = sbr.rel (!%p17_p12) target bundleno = 3 (0x3), region = 111 }

</bundles_post_ra>
